<compile_context>
chip_gen: v5e
topology: v5e:2x2
jax: 0.10.0
libtpu: 0.0.40
codegen_flags: <defaults>
</compile_context>

<pallas_src>
import jax
import jax.numpy as jnp
import numpy as np
from jax.experimental import pallas as pl
from jax.experimental.pallas import tpu as pltpu

# Problem sizes (small, TPU-tile friendly: N = 128 nodes, H*F = 128).
N = 128      # number of nodes (single node type)
DIN = 32     # in_feats['node']
H = 4        # num_heads
F = 32       # out_feats
EF = 16      # edge_feats
T = 2        # num_etypes
NEG_SLOPE = 0.2
NEG_INF = -1e30
VALID_THRESH = -1e29   # rows whose running max stays below this have no in-edges


def hetero_gat_head_kernel(feat_ref, elee_ref, er_ref, bias_ref, out_ref, attn_ref):
    """One grid step = one attention head (softmax + aggregation only)."""
    feat_h = feat_ref[0]                       # (N, F) precomputed fc projection
    er = er_ref[0]                             # (N, 1) destination-side logits

    # ---- pass 1: leaky-relu logits with the additive adjacency bias -> row max.
    m = jnp.full((N, 1), NEG_INF, dtype=jnp.float32)
    for t in range(T):
        pre = er + elee_ref[0, t:t + 1, :]               # (N,1)+(1,N) -> (N,N)
        L = jnp.maximum(pre, NEG_SLOPE * pre) + bias_ref[t].astype(jnp.float32)
        m = jnp.maximum(m, jnp.max(L, axis=-1, keepdims=True))

    # ---- pass 2: recompute logits (cheap VPU ops, no cached list -> no spills),
    # exp, keep p_t in vregs, accumulate the row-sum denominator.
    ps = []
    denom = jnp.zeros((N, 1), dtype=jnp.float32)
    for t in range(T):
        pre = er + elee_ref[0, t:t + 1, :]
        L = jnp.maximum(pre, NEG_SLOPE * pre) + bias_ref[t].astype(jnp.float32)
        p = jnp.exp(L - m)                    # masked entries underflow to 0
        ps.append(p)
        denom = denom + jnp.sum(p, axis=-1, keepdims=True)

    inv = pl.reciprocal(denom, approx=True)                 # EUP slot
    inv = inv * (2.0 - denom * inv)                         # one NR step -> ~f32 exact
    inv = jnp.where(m > VALID_THRESH, inv, 0.0)             # zero-in-degree rows -> 0

    # ---- pass 3: write normalized attention once (final layout) and do one MXU
    # aggregation per head on the normalized, etype-summed weights.
    a_sum = None
    for t in range(T):
        a_t = ps[t] * inv
        attn_ref[t, 0] = a_t
        a_sum = a_t if a_sum is None else a_sum + a_t
    out_ref[0] = jnp.dot(a_sum, feat_h, preferred_element_type=jnp.float32)


@jax.jit
def hetero_gat_forward(x, w_fc, attn_l, attn_r, edge_emb, w_fce, attn_e, adj):
    """Wrapper: cheap parameter/feature folding in XLA + pallas_call over heads."""
    # Full-width fc projection once (fills all MXU lanes), then per-head blocks.
    feat = x @ w_fc                                   # (N, H*F)
    feat3 = feat.reshape(N, H, F)
    feat_hnf = jnp.transpose(feat3, (1, 0, 2))        # (H, N, F)

    # Fold el, er, ee outside the kernel.
    el = jnp.sum(feat3 * attn_l[None], axis=-1)       # (N, H)
    er = jnp.sum(feat3 * attn_r[None], axis=-1)       # (N, H)
    e_feat = (edge_emb @ w_fce).reshape(T, H, EF)
    ee = jnp.sum(e_feat * attn_e[None], axis=-1)      # (T, H)

    elee = el.T[:, None, :] + ee.T[:, :, None]        # (H, T, N): el[s] + ee[t,h]
    er_col = er.T[:, :, None]                         # (H, N, 1)

    # Adjacency folded into an additive bias: 0 where edge, -1e30 where none.
    # Stored bf16 (halves DMA); the logit math itself stays in f32 in-kernel.
    bias = jnp.where(adj > 0.0, jnp.float32(0.0),
                     jnp.float32(NEG_INF)).astype(jnp.bfloat16)    # (T, N, N)

    out_h, res_attn = pl.pallas_call(
        hetero_gat_head_kernel,
        grid=(H,),
        out_shape=(
            jax.ShapeDtypeStruct((H, N, F), jnp.float32),
            jax.ShapeDtypeStruct((T, H, N, N), jnp.float32),   # final layout
        ),
        in_specs=[
            pl.BlockSpec((1, N, F), lambda h: (h, 0, 0)),      # per-head feat
            pl.BlockSpec((1, T, N), lambda h: (h, 0, 0)),      # el + ee rows
            pl.BlockSpec((1, N, 1), lambda h: (h, 0, 0)),      # er column
            pl.BlockSpec((T, N, N), lambda h: (0, 0, 0)),      # adjacency bias (resident)
        ],
        out_specs=(
            pl.BlockSpec((1, N, F), lambda h: (h, 0, 0)),
            pl.BlockSpec((T, 1, N, N), lambda h: (0, h, 0, 0)),
        ),
        compiler_params=pltpu.CompilerParams(
            dimension_semantics=("parallel",)),
    )(feat_hnf, elee, er_col, bias)

    rst = jnp.transpose(out_h, (1, 0, 2))     # (N, H, F) — 64 KiB, negligible
    return rst, res_attn


def reference(x, w_fc, attn_l, attn_r, edge_emb, w_fce, attn_e, adj):
    """Pure-JAX reference mirroring the PyTorch/DGL forward on dense adj."""
    feat = (x @ w_fc).reshape(N, H, F)
    el = (feat * attn_l[None]).sum(-1)                      # (N, H)
    er = (feat * attn_r[None]).sum(-1)                      # (N, H)
    e_feat = (edge_emb @ w_fce).reshape(T, H, EF)
    ee = (e_feat * attn_e[None]).sum(-1)                    # (T, H)
    logits = (er[None, :, None, :] + el[None, None, :, :]
              + ee[:, None, None, :])                       # (T, Nd, Ns, H)
    logits = jnp.where(logits >= 0, logits, NEG_SLOPE * logits)
    mask = adj[..., None] > 0
    logits = jnp.where(mask, logits, NEG_INF)
    m = jnp.max(logits, axis=(0, 2), keepdims=True)
    p = jnp.where(mask, jnp.exp(logits - m), 0.0)
    denom = jnp.sum(p, axis=(0, 2), keepdims=True)
    a = jnp.where(denom > 0, p / denom, 0.0)
    rst = jnp.einsum('tdsh,shf->dhf', a, feat)
    return rst, jnp.transpose(a, (0, 3, 1, 2))


if __name__ == "__main__":
    key = jax.random.PRNGKey(0)
    ks = jax.random.split(key, 8)
    gain = float(np.sqrt(2.0))  # nn.init.calculate_gain('relu')

    def xavier_normal(k, shape, fan_in, fan_out):
        std = gain * np.sqrt(2.0 / (fan_in + fan_out))
        return std * jax.random.normal(k, shape, dtype=jnp.float32)

    # Parameters (deterministic, shapes from __init__ with a single ntype).
    w_fc = xavier_normal(ks[0], (DIN, H * F), DIN, H * F)        # fc['node'].weight.T
    w_fce = xavier_normal(ks[1], (EF, H * EF), EF, H * EF)       # fc_e.weight.T
    attn_l = xavier_normal(ks[2], (H, F), F, H)                  # attn_l (1,H,F)->(H,F)
    attn_r = xavier_normal(ks[3], (H, F), F, H)
    attn_e = xavier_normal(ks[4], (H, EF), EF, H)
    edge_emb = jax.random.normal(ks[5], (T, EF), dtype=jnp.float32)

    # Inputs: node features + per-etype dense adjacency (self-loops on etype 0
    # so every destination node has at least one incoming edge).
    x = jax.random.normal(ks[6], (N, DIN), dtype=jnp.float32)
    adj = (jax.random.uniform(ks[7], (T, N, N)) < 0.15).astype(jnp.float32)
    adj = adj.at[0].set(jnp.maximum(adj[0], jnp.eye(N, dtype=jnp.float32)))

    rst, res_attn = hetero_gat_forward(x, w_fc, attn_l, attn_r,
                                       edge_emb, w_fce, attn_e, adj)
    jax.block_until_ready((rst, res_attn))

    rst_ref, attn_expected = reference(x, w_fc, attn_l, attn_r,
                                       edge_emb, w_fce, attn_e, adj)
    np.testing.assert_allclose(np.asarray(rst), np.asarray(rst_ref),
                               rtol=2e-3, atol=2e-3)
    np.testing.assert_allclose(np.asarray(res_attn), np.asarray(attn_expected),
                               rtol=2e-3, atol=5e-4)
    print("KERNEL_OK")
</pallas_src>

<mosaic_0001>
module attributes {stable_mosaic.version = 11 : i64} {
  func.func @hetero_gat_head_kernel(%arg0: i32, %arg1: memref<1x128x32xf32, #tpu.memory_space<vmem>>, %arg2: memref<1x2x128xf32, #tpu.memory_space<vmem>>, %arg3: memref<1x128x1xf32, #tpu.memory_space<vmem>>, %arg4: memref<2x128x128xbf16, #tpu.memory_space<vmem>>, %arg5: memref<1x128x32xf32, #tpu.memory_space<vmem>>, %arg6: memref<2x1x128x128xf32, #tpu.memory_space<vmem>>) attributes {dimension_semantics = [#tpu.dimension_semantics<parallel>], iteration_bounds = array<i64: 4>, scalar_prefetch = 0 : i64, scratch_operands = 0 : i64, tpu.core_type = #tpu.core_type<tc>, window_params = [{transform_indices = @transform_0, window_bounds = array<i64: 1, 128, 32>}, {transform_indices = @transform_1, window_bounds = array<i64: 1, 2, 128>}, {transform_indices = @transform_2, window_bounds = array<i64: 1, 128, 1>}, {pipeline_mode = #tpu.pipeline_mode<synchronous>, transform_indices = @transform_3, window_bounds = array<i64: 2, 128, 128>}, {transform_indices = @transform_4, window_bounds = array<i64: 1, 128, 32>}, {transform_indices = @transform_5, window_bounds = array<i64: 2, 1, 128, 128>}]} {
    %c0 = arith.constant 0 : index
    %c0_0 = arith.constant 0 : index
    %c0_1 = arith.constant 0 : index
    %0 = vector.load %arg1[%c0, %c0_0, %c0_1] : memref<1x128x32xf32, #tpu.memory_space<vmem>>, vector<1x128x32xf32>
    %1 = vector.shape_cast %0 : vector<1x128x32xf32> to vector<128x32xf32>
    %c0_2 = arith.constant 0 : index
    %c0_3 = arith.constant 0 : index
    %c0_4 = arith.constant 0 : index
    %2 = vector.load %arg3[%c0_2, %c0_3, %c0_4] : memref<1x128x1xf32, #tpu.memory_space<vmem>>, vector<1x128x1xf32>
    %3 = vector.shape_cast %2 : vector<1x128x1xf32> to vector<128x1xf32>
    %cst = arith.constant -1.000000e+30 : f32
    %4 = vector.broadcast %cst : f32 to vector<128x1xf32>
    %c0_5 = arith.constant 0 : index
    %c0_6 = arith.constant 0 : index
    %c0_7 = arith.constant 0 : index
    %5 = vector.load %arg2[%c0_5, %c0_6, %c0_7] : memref<1x2x128xf32, #tpu.memory_space<vmem>>, vector<1x1x128xf32>
    %6 = vector.shape_cast %5 : vector<1x1x128xf32> to vector<1x128xf32>
    %7 = vector.broadcast %3 : vector<128x1xf32> to vector<128x128xf32>
    %8 = vector.broadcast %6 : vector<1x128xf32> to vector<128x128xf32>
    %9 = arith.addf %7, %8 : vector<128x128xf32>
    %cst_8 = arith.constant 2.000000e-01 : f32
    %10 = vector.broadcast %cst_8 : f32 to vector<128x128xf32>
    %11 = arith.mulf %10, %9 : vector<128x128xf32>
    %12 = arith.maximumf %9, %11 : vector<128x128xf32>
    %c0_9 = arith.constant 0 : index
    %c0_10 = arith.constant 0 : index
    %c0_11 = arith.constant 0 : index
    %13 = vector.load %arg4[%c0_9, %c0_10, %c0_11] : memref<2x128x128xbf16, #tpu.memory_space<vmem>>, vector<1x128x128xbf16>
    %14 = vector.shape_cast %13 : vector<1x128x128xbf16> to vector<128x128xbf16>
    %15 = arith.extf %14 : vector<128x128xbf16> to vector<128x128xf32>
    %16 = arith.addf %12, %15 : vector<128x128xf32>
    %cst_12 = arith.constant dense<0xFF800000> : vector<128xf32>
    %17 = vector.multi_reduction <maximumf>, %16, %cst_12 [1] : vector<128x128xf32> to vector<128xf32>
    %18 = vector.shape_cast %17 : vector<128xf32> to vector<128x1xf32>
    %19 = arith.maximumf %4, %18 : vector<128x1xf32>
    %c0_13 = arith.constant 0 : index
    %c1 = arith.constant 1 : index
    %c0_14 = arith.constant 0 : index
    %20 = vector.load %arg2[%c0_13, %c1, %c0_14] : memref<1x2x128xf32, #tpu.memory_space<vmem>>, vector<1x1x128xf32>
    %21 = vector.shape_cast %20 : vector<1x1x128xf32> to vector<1x128xf32>
    %22 = vector.broadcast %3 : vector<128x1xf32> to vector<128x128xf32>
    %23 = vector.broadcast %21 : vector<1x128xf32> to vector<128x128xf32>
    %24 = arith.addf %22, %23 : vector<128x128xf32>
    %cst_15 = arith.constant 2.000000e-01 : f32
    %25 = vector.broadcast %cst_15 : f32 to vector<128x128xf32>
    %26 = arith.mulf %25, %24 : vector<128x128xf32>
    %27 = arith.maximumf %24, %26 : vector<128x128xf32>
    %c1_16 = arith.constant 1 : index
    %c0_17 = arith.constant 0 : index
    %c0_18 = arith.constant 0 : index
    %28 = vector.load %arg4[%c1_16, %c0_17, %c0_18] : memref<2x128x128xbf16, #tpu.memory_space<vmem>>, vector<1x128x128xbf16>
    %29 = vector.shape_cast %28 : vector<1x128x128xbf16> to vector<128x128xbf16>
    %30 = arith.extf %29 : vector<128x128xbf16> to vector<128x128xf32>
    %31 = arith.addf %27, %30 : vector<128x128xf32>
    %cst_19 = arith.constant dense<0xFF800000> : vector<128xf32>
    %32 = vector.multi_reduction <maximumf>, %31, %cst_19 [1] : vector<128x128xf32> to vector<128xf32>
    %33 = vector.shape_cast %32 : vector<128xf32> to vector<128x1xf32>
    %34 = arith.maximumf %19, %33 : vector<128x1xf32>
    %cst_20 = arith.constant 0.000000e+00 : f32
    %35 = vector.broadcast %cst_20 : f32 to vector<128x1xf32>
    %c0_21 = arith.constant 0 : index
    %c0_22 = arith.constant 0 : index
    %c0_23 = arith.constant 0 : index
    %36 = vector.load %arg2[%c0_21, %c0_22, %c0_23] : memref<1x2x128xf32, #tpu.memory_space<vmem>>, vector<1x1x128xf32>
    %37 = vector.shape_cast %36 : vector<1x1x128xf32> to vector<1x128xf32>
    %38 = vector.broadcast %3 : vector<128x1xf32> to vector<128x128xf32>
    %39 = vector.broadcast %37 : vector<1x128xf32> to vector<128x128xf32>
    %40 = arith.addf %38, %39 : vector<128x128xf32>
    %cst_24 = arith.constant 2.000000e-01 : f32
    %41 = vector.broadcast %cst_24 : f32 to vector<128x128xf32>
    %42 = arith.mulf %41, %40 : vector<128x128xf32>
    %43 = arith.maximumf %40, %42 : vector<128x128xf32>
    %c0_25 = arith.constant 0 : index
    %c0_26 = arith.constant 0 : index
    %c0_27 = arith.constant 0 : index
    %44 = vector.load %arg4[%c0_25, %c0_26, %c0_27] : memref<2x128x128xbf16, #tpu.memory_space<vmem>>, vector<1x128x128xbf16>
    %45 = vector.shape_cast %44 : vector<1x128x128xbf16> to vector<128x128xbf16>
    %46 = arith.extf %45 : vector<128x128xbf16> to vector<128x128xf32>
    %47 = arith.addf %43, %46 : vector<128x128xf32>
    %48 = vector.broadcast %34 : vector<128x1xf32> to vector<128x128xf32>
    %49 = arith.subf %47, %48 : vector<128x128xf32>
    %50 = math.exp %49 : vector<128x128xf32>
    %cst_28 = arith.constant dense<0.000000e+00> : vector<128xf32>
    %51 = vector.multi_reduction <add>, %50, %cst_28 [1] : vector<128x128xf32> to vector<128xf32>
    %52 = vector.shape_cast %51 : vector<128xf32> to vector<128x1xf32>
    %53 = arith.addf %35, %52 : vector<128x1xf32>
    %c0_29 = arith.constant 0 : index
    %c1_30 = arith.constant 1 : index
    %c0_31 = arith.constant 0 : index
    %54 = vector.load %arg2[%c0_29, %c1_30, %c0_31] : memref<1x2x128xf32, #tpu.memory_space<vmem>>, vector<1x1x128xf32>
    %55 = vector.shape_cast %54 : vector<1x1x128xf32> to vector<1x128xf32>
    %56 = vector.broadcast %3 : vector<128x1xf32> to vector<128x128xf32>
    %57 = vector.broadcast %55 : vector<1x128xf32> to vector<128x128xf32>
    %58 = arith.addf %56, %57 : vector<128x128xf32>
    %cst_32 = arith.constant 2.000000e-01 : f32
    %59 = vector.broadcast %cst_32 : f32 to vector<128x128xf32>
    %60 = arith.mulf %59, %58 : vector<128x128xf32>
    %61 = arith.maximumf %58, %60 : vector<128x128xf32>
    %c1_33 = arith.constant 1 : index
    %c0_34 = arith.constant 0 : index
    %c0_35 = arith.constant 0 : index
    %62 = vector.load %arg4[%c1_33, %c0_34, %c0_35] : memref<2x128x128xbf16, #tpu.memory_space<vmem>>, vector<1x128x128xbf16>
    %63 = vector.shape_cast %62 : vector<1x128x128xbf16> to vector<128x128xbf16>
    %64 = arith.extf %63 : vector<128x128xbf16> to vector<128x128xf32>
    %65 = arith.addf %61, %64 : vector<128x128xf32>
    %66 = vector.broadcast %34 : vector<128x1xf32> to vector<128x128xf32>
    %67 = arith.subf %65, %66 : vector<128x128xf32>
    %68 = math.exp %67 : vector<128x128xf32>
    %cst_36 = arith.constant dense<0.000000e+00> : vector<128xf32>
    %69 = vector.multi_reduction <add>, %68, %cst_36 [1] : vector<128x128xf32> to vector<128xf32>
    %70 = vector.shape_cast %69 : vector<128xf32> to vector<128x1xf32>
    %71 = arith.addf %53, %70 : vector<128x1xf32>
    %72 = tpu.reciprocal %71 {approx = true} : vector<128x1xf32> -> vector<128x1xf32>
    %73 = arith.mulf %71, %72 : vector<128x1xf32>
    %cst_37 = arith.constant 2.000000e+00 : f32
    %74 = vector.broadcast %cst_37 : f32 to vector<128x1xf32>
    %75 = arith.subf %74, %73 : vector<128x1xf32>
    %76 = arith.mulf %72, %75 : vector<128x1xf32>
    %cst_38 = arith.constant -1.000000e+29 : f32
    %77 = vector.broadcast %cst_38 : f32 to vector<128x1xf32>
    %78 = arith.cmpf ogt, %34, %77 : vector<128x1xf32>
    %cst_39 = arith.constant 0.000000e+00 : f32
    %79 = vector.broadcast %cst_39 : f32 to vector<128x1xf32>
    %80 = arith.select %78, %76, %79 : vector<128x1xi1>, vector<128x1xf32>
    %81 = vector.broadcast %80 : vector<128x1xf32> to vector<128x128xf32>
    %82 = arith.mulf %50, %81 : vector<128x128xf32>
    %c0_40 = arith.constant 0 : index
    %c0_41 = arith.constant 0 : index
    %c0_42 = arith.constant 0 : index
    %c0_43 = arith.constant 0 : index
    %83 = vector.load %arg6[%c0_40, %c0_41, %c0_42, %c0_43] : memref<2x1x128x128xf32, #tpu.memory_space<vmem>>, vector<1x1x128x128xf32>
    %84 = vector.shape_cast %83 : vector<1x1x128x128xf32> to vector<128x128xf32>
    %85 = vector.shape_cast %82 : vector<128x128xf32> to vector<1x1x128x128xf32>
    tpu.vector_store %arg6[%c0_40, %c0_41, %c0_42, %c0_43], %85 {strides = array<i32>} : memref<2x1x128x128xf32, #tpu.memory_space<vmem>>, vector<1x1x128x128xf32>,
    %86 = vector.broadcast %80 : vector<128x1xf32> to vector<128x128xf32>
    %87 = arith.mulf %68, %86 : vector<128x128xf32>
    %c1_44 = arith.constant 1 : index
    %c0_45 = arith.constant 0 : index
    %c0_46 = arith.constant 0 : index
    %c0_47 = arith.constant 0 : index
    %88 = vector.load %arg6[%c1_44, %c0_45, %c0_46, %c0_47] : memref<2x1x128x128xf32, #tpu.memory_space<vmem>>, vector<1x1x128x128xf32>
    %89 = vector.shape_cast %88 : vector<1x1x128x128xf32> to vector<128x128xf32>
    %90 = vector.shape_cast %87 : vector<128x128xf32> to vector<1x1x128x128xf32>
    tpu.vector_store %arg6[%c1_44, %c0_45, %c0_46, %c0_47], %90 {strides = array<i32>} : memref<2x1x128x128xf32, #tpu.memory_space<vmem>>, vector<1x1x128x128xf32>,
    %91 = arith.addf %82, %87 : vector<128x128xf32>
    %cst_48 = arith.constant dense<0.000000e+00> : vector<128x32xf32>
    %92 = tpu.matmul %91, %1, %cst_48 {dimension_numbers = #tpu.dot_dimension_numbers<[1], [0], [0], [1], [0, 0, 1, 1], [], []>} : vector<128x128xf32>, vector<128x32xf32>, vector<128x32xf32> -> vector<128x32xf32>
    %c0_49 = arith.constant 0 : index
    %c0_50 = arith.constant 0 : index
    %c0_51 = arith.constant 0 : index
    %93 = vector.load %arg5[%c0_49, %c0_50, %c0_51] : memref<1x128x32xf32, #tpu.memory_space<vmem>>, vector<1x128x32xf32>
    %94 = vector.shape_cast %93 : vector<1x128x32xf32> to vector<128x32xf32>
    %95 = vector.shape_cast %92 : vector<128x32xf32> to vector<1x128x32xf32>
    tpu.vector_store %arg5[%c0_49, %c0_50, %c0_51], %95 {strides = array<i32>} : memref<1x128x32xf32, #tpu.memory_space<vmem>>, vector<1x128x32xf32>,
    return
  }
  func.func @transform_0(%arg0: i32) -> (i32, i32, i32) {
    %c0_i32 = arith.constant 0 : i32
    %c0_i32_0 = arith.constant 0 : i32
    %c0_i32_1 = arith.constant 0 : i32
    return %arg0, %c0_i32, %c0_i32_0 : i32, i32, i32
  }
  func.func @transform_1(%arg0: i32) -> (i32, i32, i32) {
    %c0_i32 = arith.constant 0 : i32
    %c0_i32_0 = arith.constant 0 : i32
    %c0_i32_1 = arith.constant 0 : i32
    return %arg0, %c0_i32, %c0_i32_0 : i32, i32, i32
  }
  func.func @transform_2(%arg0: i32) -> (i32, i32, i32) {
    %c0_i32 = arith.constant 0 : i32
    %c0_i32_0 = arith.constant 0 : i32
    %c0_i32_1 = arith.constant 0 : i32
    return %arg0, %c0_i32, %c0_i32_0 : i32, i32, i32
  }
  func.func @transform_3(%arg0: i32) -> (i32, i32, i32) {
    %c0_i32 = arith.constant 0 : i32
    %c0_i32_0 = arith.constant 0 : i32
    %c0_i32_1 = arith.constant 0 : i32
    %c0_i32_2 = arith.constant 0 : i32
    return %c0_i32, %c0_i32_0, %c0_i32_1 : i32, i32, i32
  }
  func.func @transform_4(%arg0: i32) -> (i32, i32, i32) {
    %c0_i32 = arith.constant 0 : i32
    %c0_i32_0 = arith.constant 0 : i32
    %c0_i32_1 = arith.constant 0 : i32
    return %arg0, %c0_i32, %c0_i32_0 : i32, i32, i32
  }
  func.func @transform_5(%arg0: i32) -> (i32, i32, i32, i32) {
    %c0_i32 = arith.constant 0 : i32
    %c0_i32_0 = arith.constant 0 : i32
    %c0_i32_1 = arith.constant 0 : i32
    %c0_i32_2 = arith.constant 0 : i32
    return %c0_i32, %arg0, %c0_i32_0, %c0_i32_1 : i32, i32, i32, i32
  }
}

</mosaic_0001>

<bundles_post_ra>
// kernel: hetero_gat_forward.1
= control target key start
LH: loop header
LB: loop body
LE: loop exit
PB: predicated region body
PF: predicated region fallthrough
CT: control target
= control target key end

     0   :  { %11 = vsyncpa [#allocation3], 0  ;;  %s2375_s0 = inlined_call_operand.vmem [shape: f32[4,128,32], index: 0, kind: input, shape index: {}]   ;;  %s2376_s1 = inlined_call_operand.vmem [shape: f32[4,2,128], index: 1, kind: input, shape index: {}]   ;;  %s2377_s2 = inlined_call_operand.vmem [shape: f32[4,128,1], index: 2, kind: input, shape index: {}]   ;;  %s2378_s3 = inlined_call_operand.vmem [shape: bf16[2,128,128], index: 3, kind: input, shape index: {}]   ;;  %s2379_s4 = inlined_call_operand.vmem [shape: f32[4,128,32], index: 4, kind: output, shape index: {0}]   ;;  %s2380_s5 = inlined_call_operand.hbm [shape: f32[2,4,128,128], index: 5, kind: output, shape index: {1}]  }
   0x1   :  { %13 = vsyncpa [#allocation3 + $0x1], 0  ;;  %s1695_s18 = smov 0   ;;  %s1697_s19 = smov 0  }
   0x2   :  { %s1699_s20 = smov 0   ;;  %s1701_s21 = smov 0  }
   0x3 LB: > { %s1716_s22 = sadd.s32 4294967295, %s1655_s21   ;;  %s1287_s23 = sadd.s32 4294967294, %s1655_s21   ;;  %s1655_s21 = sphi %s1701_s21, %s2386_s21   ;;  %s1651_s20 = sphi %s1699_s20, %s2385_s20   ;;  %s1647_s19 = sphi %s1697_s19, %s2384_s19   ;;  %s1643_s18 = sphi %s1695_s18, %s2383_s18  }
   0x4   : > { %s1720_s24 = sadd.s32 1, %s1655_s21   ;;  %s151_s25 = sadd.s32 1, %s1651_s20 }
   0x5   : > { %s148_s26 = ssub.s32 %s1655_s21, %s1720_s24  ;;  %p161_p0 = scmp.ne.s32.totalorder %s1651_s20, %s1647_s19 }
   0x6   : > { %p149_p1 = scmp.eq.s32.totalorder %s148_s26, 0  ;;  %p162_p2 = scmp.eq.s32.totalorder %s1716_s22, 3 }
   0x7   : > { %p167_p3 = scmp.ne.s32.totalorder %s1647_s19, %s1643_s18  ;;  %p168_p4 = scmp.eq.s32.totalorder %s1287_s23, 3 }
   0x8   : > { %s1731_s27 = scalar_select %p149_p1, %s1651_s20, %s151_s25  }
   0x9   : > { %p1733_p5 = por %p162_p2, %p161_p0  ;;  %p1737_p6 = por %p168_p4, %p167_p3 }
   0xa   : > { %p1290_p7 = scmp.ge.s32.totalorder %s1655_s21, 1  ;;  %p212_p8 = scmp.lt.s32.totalorder %s1655_s21, 5 }
   0xc   : > { %p213_p9 = pnand %p1290_p7, %p212_p8 }
   0xd   : > { %p254_p10 = scmp.lt.s32.totalorder (!%p213_p9), %s1716_s22, 3  ;;  %s251_s16 = sand.u32 (!%p213_p9), 1, %s1647_s19  }
   0xe   : > { %216 = sbr.rel (%p213_p9) target bundleno = 653 (0x28d), region = 36  ;;  %s1291_s26 = sshll.u32 (!%p213_p9), %s251_s16, 8 }
  0x13   : > { %v1657_v0 = vmov 0   ;;  %s255_s30 = scalar_select %p254_p10, %s1716_s22, 3  ;;  %v1783_v21 = vld [vmem:[%s2378_s3 + $0x60] sm:$0xff]   ;;  %v1409_v40 = vld [vmem:[%s2378_s3 + $0x30] sm:$0xff]  }
  0x14   : > { %1521 = vset.pattern.permute.xlu1 %v1657_v0  ;;  %1520 = vset.pattern.permute.xlu0 %v1657_v0  ;;  %v1407_v22 = vld [vmem:[%s2378_s3 + $0x20] sm:$0xff]   ;;  %v1390_v30 = vunpack.c.l.bf16 %v1783_v21  ;;  %v1366_v52 = vunpack.c.l.bf16 %v1409_v40  ;;  %v1827_v60 = vld [vmem:[%s2378_s3 + $0x70] sm:$0xff]  }
  0x15   : > { %1522 = vset.pattern.permute.xlu2 %v1657_v0  ;;  %s1745_s6 = sshll.u32 %s255_s30, 7  ;;  %s1294_s7 = sshll.u32 %s255_s30, 1  ;;  %v1358_v31 = vunpack.c.l.bf16 %v1407_v22  ;;  %v1803_v38 = vld [vmem:[%s2378_s3] sm:$0xff]   ;;  %v1359_v44 = vunpack.c.h.bf16 %v1407_v22  ;;  %v1832_v61 = vld [vmem:[%s2378_s3 + $0x50] sm:$0xff]   ;;  %v1398_v63 = vunpack.c.l.bf16 %v1827_v60 }
  0x16   : > { %s1750_s10 = scalar_lea.vmem %s2376_s1, %s1294_s7  ;;  %s1756_s13 = scalar_lea.vmem %s2377_s2, %s1745_s6  ;;  %v1342_v48 = vunpack.c.l.bf16 %v1803_v38 }
  0x17   : > { %v297_v1 = vld [vmem:[%s1756_s13 + $0x40] sm:$0xff]  ;;  %v298_v3 = vld [vmem:[%s1756_s13 + $0x48] sm:$0xff]  ;;  %v299_v9 = vld [vmem:[%s1756_s13 + $0x50] sm:$0xff]  ;;  %s2145_s25 = scalar_lea.vmem %s2375_s0, %s1745_s6  ;;  %s2220_s30 = scalar_lea.vmem [#allocation2], %s1291_s26 }
  0x18   : > { %348 = vperm.xlu0 %1520, %v297_v1   ;;  %v289_v2 = vld [vmem:[%s1756_s13] sm:$0xff]  ;;  %353 = vperm.xlu2 %1522, %v298_v3   ;;  %v302_v6 = vld [vmem:[%s1756_s13 + $0x68] sm:$0xff]  ;;  %v303_v10 = vld [vmem:[%s1756_s13 + $0x70] sm:$0xff]  ;;  %v1367_v1 = vunpack.c.h.bf16 %v1409_v40  ;;  %s2303_s9 = scalar_lea.vmem %s2379_s4, %s1745_s6  ;;  %s1135_s6 = scalar_lea.sflag [#allocation3], %s251_s16 }
  0x19   : > { %308 = vperm.xlu1 %1521, %v289_v2   ;;  %v301_v4 = vld [vmem:[%s1756_s13 + $0x60] sm:$0xff]  ;;  %v290_v7 = vld [vmem:[%s1756_s13 + $0x8] sm:$0xff]  ;;  %v291_v11 = vld [vmem:[%s1756_s13 + $0x10] sm:$0xff]  ;;  %v1382_v2 = vunpack.c.l.bf16 %v1832_v61 }
  0x1a   : > { %v293_v5 = vld [vmem:[%s1756_s13 + $0x20] sm:$0xff]  ;;  %v294_v8 = vld [vmem:[%s1756_s13 + $0x28] sm:$0xff]  ;;  %v295_v12 = vld [vmem:[%s1756_s13 + $0x30] sm:$0xff] }
  0x1b   : > { %v300_v13 = vld [vmem:[%s1756_s13 + $0x58] sm:$0xff]  ;;  %v1775_v17 = vld [vmem:[%s1750_s10] ss:$0 sm:$0xff]  ;;  %v1778_v18 = vld [vmem:[%s1750_s10 + $0x1] ss:$0 sm:$0xff] }
  0x1c   : > { %v304_v14 = vld [vmem:[%s1756_s13 + $0x78] sm:$0xff] }
  0x1d   : > { %v292_v15 = vld [vmem:[%s1756_s13 + $0x18] sm:$0xff] }
  0x1e   : > { %v296_v16 = vld [vmem:[%s1756_s13 + $0x38] sm:$0xff] }
  0x20   : > { %368 = vperm.xlu0 %1520, %v301_v4   ;;  %373 = vperm.xlu2 %1522, %v302_v6  }
  0x21   : > { %328 = vperm.xlu1 %1521, %v293_v5  }
  0x28   : > { %313 = vperm.xlu0 %1520, %v290_v7   ;;  %358 = vperm.xlu2 %1522, %v299_v9  }
  0x29   : > { %333 = vperm.xlu1 %1521, %v294_v8  }
  0x30   : > { %378 = vperm.xlu0 %1520, %v303_v10   ;;  %338 = vperm.xlu2 %1522, %v295_v12  }
  0x31   : > { %318 = vperm.xlu1 %1521, %v291_v11  }
  0x38   : > { %363 = vperm.xlu0 %1520, %v300_v13   ;;  %323 = vperm.xlu2 %1522, %v292_v15   ;;  %v1405_v13 = vld [vmem:[%s2378_s3 + $0x10] sm:$0xff]  }
  0x39   : > { %383 = vperm.xlu1 %1521, %v304_v14  }
  0x40   : > { %343 = vperm.xlu0 %1520, %v296_v16  }
  0x72   : > { %v354_v19 = vpop.permute.xlu2 %353 }
  0x73   : > { %v396_v23 = vadd.f32 %v1775_v17, %v354_v19  ;;  %v542_v7 = vadd.f32 %v1778_v18, %v354_v19  ;;  %v1343_v19 = vunpack.c.h.bf16 %v1803_v38 }
  0x75   : > { %v412_v32 = vmul.f32 0.2, %v396_v23  ;;  %v558_v14 = vmul.f32 0.2, %v542_v7 }
  0x77   : > { %v428_v43 = vmax.f32 %v396_v23, %v412_v32 }
  0x79   : > { %v1818_v54 = vadd.f32 %v1359_v44, %v428_v43 }
  0x7a   : > { %v1808_v41 = vpop.permute.xlu2 %373 }
  0x7b   : > { %v400_v45 = vadd.f32 %v1775_v17, %v1808_v41 }
  0x7d   : > { %v416_v55 = vmul.f32 0.2, %v400_v45 }
  0x7f   : > { %v432_v0 = vmax.f32 %v400_v45, %v416_v55 }
  0x81   : > { %v1842_v8 = vadd.f32 %v1367_v1, %v432_v0 }
  0x8a   : > { %v349_v20 = vpop.permute.xlu0 %348 }
  0x8b   : > { %v395_v24 = vadd.f32 %v1775_v17, %v349_v20  ;;  %v541_v25 = vadd.f32 %v1778_v18, %v349_v20  ;;  %v1791_v26 = vpop.permute.xlu1 %308  ;;  %v1350_v20 = vunpack.c.l.bf16 %v1405_v13 }
  0x8c   : > { %v387_v27 = vadd.f32 %v1775_v17, %v1791_v26  ;;  %v533_v22 = vadd.f32 %v1778_v18, %v1791_v26  ;;  %v1411_v26 = vld [vmem:[%s2378_s3 + $0x40] sm:$0xff]  }
  0x8d   : > { %v411_v28 = vmul.f32 0.2, %v395_v24  ;;  %v557_v29 = vmul.f32 0.2, %v541_v25  ;;  %v1374_v40 = vunpack.c.l.bf16 %v1411_v26 }
  0x8e   : > { %v403_v35 = vmul.f32 0.2, %v387_v27 }
  0x8f   : > { %v573_v33 = vmax.f32 %v541_v25, %v557_v29  ;;  %v427_v34 = vmax.f32 %v395_v24, %v411_v28  ;;  %v574_v28 = vmax.f32 %v542_v7, %v558_v14  ;;  %v1391_v29 = vunpack.c.h.bf16 %v1783_v21  ;;  %v1911_v14 = vld [vmem:[%s2378_s3 + $0x18] sm:$0xff]  }
  0x90   : > { %v419_v47 = vmax.f32 %v387_v27, %v403_v35  ;;  %v546_v21 = vadd.f32 %v1778_v18, %v1808_v41  ;;  %v1892_v41 = vld [vmem:[%s2378_s3 + $0x68] sm:$0xff]  }
  0x91   : > { %v1796_v36 = vadd.f32 %v1390_v30, %v573_v33  ;;  %v1798_v37 = vadd.f32 %v1358_v31, %v427_v34  ;;  %v549_v30 = vmul.f32 0.2, %v533_v22  ;;  %v359_v34 = vpop.permute.xlu2 %358  ;;  %v1870_v38 = vadd.f32 %v1391_v29, %v574_v28 }
  0x92   : > { %v369_v39 = vpop.permute.xlu0 %368  ;;  %v1820_v56 = vadd.f32 %v1342_v48, %v419_v47  ;;  %v1351_v48 = vunpack.c.h.bf16 %v1405_v13 }
  0x93   : > { %v399_v42 = vadd.f32 %v1775_v17, %v369_v39  ;;  %646 = vmax.xlane.f32.xlu0 %v1796_v36  ;;  %499 = vmax.xlane.f32.xlu1 %v1798_v37  ;;  %v329_v46 = vpop.permute.xlu1 %328  ;;  %v545_v50 = vadd.f32 %v1778_v18, %v369_v39  ;;  %v1875_v39 = vld [vmem:[%s2378_s3 + $0x38] sm:$0xff]   ;;  %v565_v45 = vmax.f32 %v533_v22, %v549_v30 }
  0x94   : > { %v537_v51 = vadd.f32 %v1778_v18, %v329_v46  ;;  %v391_v3 = vadd.f32 %v1775_v17, %v329_v46  ;;  %v1370_v44 = vunpack.c.l.bf16 %v1875_v39  ;;  %v1418_v22 = vld [vmem:[%s2378_s3 + $0x78] sm:$0xff]  }
  0x95   : > { %v415_v49 = vmul.f32 0.2, %v399_v42  ;;  %v561_v57 = vmul.f32 0.2, %v545_v50 }
  0x96   : > { %v553_v58 = vmul.f32 0.2, %v537_v51  ;;  %v407_v9 = vmul.f32 0.2, %v391_v3 }
  0x97   : > { %v431_v53 = vmax.f32 %v399_v42, %v415_v49  ;;  %v577_v5 = vmax.f32 %v545_v50, %v561_v57  ;;  %v543_v42 = vadd.f32 %v1778_v18, %v359_v34  ;;  %v562_v49 = vmul.f32 0.2, %v546_v21 }
  0x98   : > { %v569_v6 = vmax.f32 %v537_v51, %v553_v58  ;;  %v423_v25 = vmax.f32 %v391_v3, %v407_v9  ;;  %v397_v57 = vadd.f32 %v1775_v17, %v359_v34 }
  0x99   : > { %v1822_v59 = vadd.f32 %v1366_v52, %v431_v53  ;;  %v1844_v11 = vadd.f32 %v1398_v63, %v577_v5  ;;  %v559_v50 = vmul.f32 0.2, %v543_v42  ;;  %v1887_v52 = vadd.f32 %v1374_v40, %v565_v45  ;;  %v339_v58 = vpop.permute.xlu2 %338 }
  0x9a   : > { %v314_v62 = vpop.permute.xlu0 %313  ;;  %v1846_v12 = vadd.f32 %v1382_v2, %v569_v6  ;;  %v1865_v33 = vadd.f32 %v1350_v20, %v423_v25  ;;  %v393_v63 = vadd.f32 %v1775_v17, %v339_v58  ;;  %v578_v1 = vmax.f32 %v546_v21, %v562_v49 }
  0x9b   : > { %507 = vmax.xlane.f32.xlu2 %v1822_v59  ;;  %501 = vmax.xlane.f32.xlu0 %v1818_v54  ;;  %v388_v4 = vadd.f32 %v1775_v17, %v314_v62  ;;  %v1851_v16 = vpop.permute.xlu1 %333  ;;  %v534_v46 = vadd.f32 %v1778_v18, %v314_v62  ;;  %v1394_v62 = vunpack.c.l.bf16 %v1892_v41  ;;  %v575_v0 = vmax.f32 %v543_v42, %v559_v50 }
  0x9c   : > { %483 = vmax.xlane.f32.xlu1 %v1820_v56  ;;  %v392_v27 = vadd.f32 %v1775_v17, %v1851_v16  ;;  %v1399_v2 = vunpack.c.h.bf16 %v1827_v60  ;;  %v1375_v5 = vunpack.c.h.bf16 %v1411_v26  ;;  %v413_v7 = vmul.f32 0.2, %v397_v57  ;;  %v1408_v60 = vld [vmem:[%s2378_s3 + $0x28] sm:$0xff]  }
  0x9d   : > { %v404_v10 = vmul.f32 0.2, %v388_v4  ;;  %v550_v53 = vmul.f32 0.2, %v534_v46  ;;  %v409_v9 = vmul.f32 0.2, %v393_v63  ;;  %v538_v25 = vadd.f32 %v1778_v18, %v1851_v16 }
  0x9e   : > { %v408_v35 = vmul.f32 0.2, %v392_v27  ;;  %v1906_v13 = vadd.f32 %v1399_v2, %v578_v1  ;;  %v429_v29 = vmax.f32 %v397_v57, %v413_v7  ;;  %v1402_v26 = vunpack.c.l.bf16 %v1418_v22  ;;  %v1412_v16 = vld [vmem:[%s2378_s3 + $0x48] sm:$0xff]  }
  0x9f   : > { %v420_v24 = vmax.f32 %v388_v4, %v404_v10  ;;  %v566_v4 = vmax.f32 %v534_v46, %v550_v53  ;;  %v1904_v10 = vadd.f32 %v1394_v62, %v575_v0  ;;  %v425_v28 = vmax.f32 %v393_v63, %v409_v9 }
  0xa0   : > { %v424_v47 = vmax.f32 %v392_v27, %v408_v35  ;;  %v554_v34 = vmul.f32 0.2, %v538_v25  ;;  %v1383_v45 = vunpack.c.h.bf16 %v1832_v61  ;;  %v1378_v46 = vunpack.c.l.bf16 %v1412_v16 }
  0xa1   : > { %v1863_v32 = vadd.f32 %v1343_v19, %v420_v24  ;;  %v1362_v24 = vunpack.c.l.bf16 %v1408_v60  ;;  %v539_v53 = vadd.f32 %v1778_v18, %v339_v58  ;;  %v1363_v62 = vunpack.c.h.bf16 %v1408_v60  ;;  %v1414_v58 = vld [vmem:[%s2378_s3 + $0x58] sm:$0xff]  }
  0xa2   : > { %v379_v15 = vpop.permute.xlu0 %378  ;;  %v1894_v55 = vadd.f32 %v1351_v48, %v424_v47  ;;  %v570_v49 = vmax.f32 %v538_v25, %v554_v34  ;;  %v1403_v7 = vunpack.c.h.bf16 %v1418_v22 }
  0xa3   : > { %654 = vmax.xlane.f32.xlu2 %v1844_v11  ;;  %638 = vmax.xlane.f32.xlu0 %v1846_v12  ;;  %v401_v23 = vadd.f32 %v1775_v17, %v379_v15  ;;  %v547_v3 = vadd.f32 %v1778_v18, %v379_v15  ;;  %v319_v6 = vpop.permute.xlu1 %318  ;;  %v1916_v15 = vadd.f32 %v1375_v5, %v566_v4  ;;  %v324_v4 = vpop.permute.xlu2 %323  ;;  %v1404_v5 = vld [vmem:[%s2378_s3 + $0x8] sm:$0xff]  }
  0xa4   : > { %509 = vmax.xlane.f32.xlu1 %v1842_v8  ;;  %v535_v27 = vadd.f32 %v1778_v18, %v319_v6  ;;  %v1934_v40 = vadd.f32 %v1362_v24, %v429_v29  ;;  %v389_v47 = vadd.f32 %v1775_v17, %v319_v6  ;;  %v1948_v1 = vadd.f32 %v1383_v45, %v570_v49 }
  0xa5   : > { %v417_v31 = vmul.f32 0.2, %v401_v23  ;;  %v563_v19 = vmul.f32 0.2, %v547_v3  ;;  %v1346_v6 = vunpack.c.l.bf16 %v1404_v5  ;;  %v536_v9 = vadd.f32 %v1778_v18, %v324_v4 }
  0xa6   : > { %v551_v35 = vmul.f32 0.2, %v535_v27  ;;  %v405_v63 = vmul.f32 0.2, %v389_v47  ;;  %v390_v24 = vadd.f32 %v1775_v17, %v324_v4  ;;  %v1347_v49 = vunpack.c.h.bf16 %v1404_v5 }
  0xa7   : > { %v433_v43 = vmax.f32 %v401_v23, %v417_v31  ;;  %v1354_v23 = vunpack.c.l.bf16 %v1911_v14  ;;  %v579_v31 = vmax.f32 %v547_v3, %v563_v19  ;;  %v555_v3 = vmul.f32 0.2, %v539_v53 }
  0xa8   : > { %v567_v50 = vmax.f32 %v535_v27, %v551_v35  ;;  %v421_v19 = vmax.f32 %v389_v47, %v405_v63  ;;  %v1386_v27 = vunpack.c.l.bf16 %v1414_v58  ;;  %v1379_v35 = vunpack.c.h.bf16 %v1412_v16 }
  0xa9   : > { %v1885_v51 = vadd.f32 %v1370_v44, %v433_v43  ;;  %v1932_v21 = vadd.f32 %v1354_v23, %v425_v28  ;;  %v1936_v44 = vadd.f32 %v1402_v26, %v579_v31  ;;  %v571_v25 = vmax.f32 %v539_v53, %v555_v3 }
  0xaa   : > { %v1918_v20 = vpop.permute.xlu0 %363  ;;  %v1950_v2 = vadd.f32 %v1378_v46, %v567_v50  ;;  %v552_v28 = vmul.f32 0.2, %v536_v9  ;;  %v406_v26 = vmul.f32 0.2, %v390_v24  ;;  %v1371_v46 = vunpack.c.h.bf16 %v1875_v39 }
  0xab   : > { %485 = vmax.xlane.f32.xlu0 %v1863_v32  ;;  %491 = vmax.xlane.f32.xlu2 %v1865_v33  ;;  %v398_v30 = vadd.f32 %v1775_v17, %v1918_v20  ;;  %v384_v43 = vpop.permute.xlu1 %383  ;;  %v1970_v34 = vadd.f32 %v1386_v27, %v571_v25 }
  0xac   : > { %648 = vmax.xlane.f32.xlu1 %v1870_v38  ;;  %v548_v48 = vadd.f32 %v1778_v18, %v384_v43  ;;  %v402_v60 = vadd.f32 %v1775_v17, %v384_v43  ;;  %v568_v43 = vmax.f32 %v536_v9, %v552_v28 }
  0xad   : > { %v414_v42 = vmul.f32 0.2, %v398_v30 }
  0xae   : > { %v564_v0 = vmul.f32 0.2, %v548_v48  ;;  %v418_v29 = vmul.f32 0.2, %v402_v60  ;;  %v1979_v53 = vadd.f32 %v1379_v35, %v568_v43 }
  0xaf   : > { %v430_v57 = vmax.f32 %v398_v30, %v414_v42  ;;  %v1966_v30 = vadd.f32 %v1346_v6, %v421_v19  ;;  %v544_v42 = vadd.f32 %v1778_v18, %v1918_v20 }
  0xb0   : > { %v580_v23 = vmax.f32 %v548_v48, %v564_v0  ;;  %v434_v45 = vmax.f32 %v402_v60, %v418_v29  ;;  %v422_v48 = vmax.f32 %v390_v24, %v406_v26  ;;  %v1387_v0 = vunpack.c.h.bf16 %v1414_v58 }
  0xb1   : > { %v1952_v61 = vadd.f32 %v1363_v62, %v430_v57  ;;  %v560_v50 = vmul.f32 0.2, %v544_v42 }
  0xb2   : > { %v1968_v31 = vadd.f32 %v1403_v7, %v580_v23  ;;  %v344_v22 = vpop.permute.xlu0 %343  ;;  %v1981_v57 = vadd.f32 %v1371_v46, %v434_v45  ;;  %v1983_v63 = vadd.f32 %v1347_v49, %v422_v48  ;;  %v1355_v7 = vunpack.c.h.bf16 %v1911_v14 }
  0xb3   : > { %511 = vmax.xlane.f32.xlu0 %v1885_v51  ;;  %630 = vmax.xlane.f32.xlu2 %v1887_v52  ;;  %v540_v47 = vadd.f32 %v1778_v18, %v344_v22  ;;  %v394_v39 = vadd.f32 %v1775_v17, %v344_v22  ;;  %v576_v20 = vmax.f32 %v544_v42, %v560_v50  ;;  %v1395_v18 = vunpack.c.h.bf16 %v1892_v41 }
  0xb4   : > { %493 = vmax.xlane.f32.xlu1 %v1894_v55 }
  0xb5   : > { %v556_v62 = vmul.f32 0.2, %v540_v47  ;;  %v410_v3 = vmul.f32 0.2, %v394_v39  ;;  %v1990_v4 = vadd.f32 %v1395_v18, %v576_v20 }
  0xb7   : > { %v572_v16 = vmax.f32 %v540_v47, %v556_v62  ;;  %v426_v6 = vmax.f32 %v394_v39, %v410_v3 }
  0xb9   : > { %v1992_v5 = vadd.f32 %v1387_v0, %v572_v16  ;;  %v1997_v9 = vadd.f32 %v1355_v7, %v426_v6 }
  0xbb   : > { %650 = vmax.xlane.f32.xlu0 %v1904_v10  ;;  %656 = vmax.xlane.f32.xlu2 %v1906_v13 }
  0xbc   : > { %632 = vmax.xlane.f32.xlu1 %v1916_v15 }
  0xc3   : > { %495 = vmax.xlane.f32.xlu0 %v1932_v21  ;;  %503 = vmax.xlane.f32.xlu2 %v1934_v40 }
  0xc4   : > { %658 = vmax.xlane.f32.xlu1 %v1936_v44 }
  0xcb   : > { %640 = vmax.xlane.f32.xlu2 %v1948_v1  ;;  %634 = vmax.xlane.f32.xlu0 %v1950_v2 }
  0xcc   : > { %505 = vmax.xlane.f32.xlu1 %v1952_v61 }
  0xd3   : > { %487 = vmax.xlane.f32.xlu2 %v1966_v30  ;;  %660 = vmax.xlane.f32.xlu0 %v1968_v31 }
  0xd4   : > { %642 = vmax.xlane.f32.xlu1 %v1970_v34 }
  0xdb   : > { %636 = vmax.xlane.f32.xlu0 %v1979_v53  ;;  %513 = vmax.xlane.f32.xlu2 %v1981_v57 }
  0xdc   : > { %489 = vmax.xlane.f32.xlu1 %v1983_v63 }
  0xe3   : > { %652 = vmax.xlane.f32.xlu2 %v1990_v4 }
  0xe4   : > { %644 = vmax.xlane.f32.xlu1 %v1992_v5 }
  0xeb   : > { %497 = vmax.xlane.f32.xlu2 %v1997_v9 }
 0x106   : > { %v647_v17 = vpop.xlane.xlu0 %646  ;;  %v500_v41 = vpop.xlane.xlu1 %499 }
 0x107   : > { %v523_v60 = vmax.f32 %v500_v41, -1e+30 }
 0x109   : > { %v2000_v58 = vmax.f32 %v523_v60, %v647_v17 }
 0x10b   : > { %v686_v19 = vsub.f32 %v1798_v37, %v2000_v58  ;;  %v782_v23 = vsub.f32 %v1796_v36, %v2000_v58  ;;  %vm942_vm0 = vcmp.gt.f32.partialorder %v2000_v58, -1e+29 }
 0x10d   : > { %v806_v24 = vmul.f32 1.442695, %v782_v23  ;;  %v710_v25 = vmul.f32 1.442695, %v686_v19 }
 0x10e   : > { %v508_v27 = vpop.xlane.xlu2 %507  ;;  %v502_v28 = vpop.xlane.xlu0 %501 }
 0x10f   : > { %v484_v14 = vpop.xlane.xlu1 %483  ;;  %1525 = vpow2.f32 %v806_v24  ;;  %v527_v26 = vmax.f32 %v508_v27, -1e+30  ;;  %v524_v62 = vmax.f32 %v502_v28, -1e+30 }
 0x110   : > { %1527 = vpow2.f32 %v710_v25  ;;  %v515_v0 = vmax.f32 %v484_v14, -1e+30 }
 0x115   : > { %v2006_v29 = vpop.eup %1525 }
 0x116   : > { %v2008_v22 = vpop.eup %1527  ;;  %v655_v35 = vpop.xlane.xlu2 %654  ;;  %838 = vadd.xlane.f32.xlu1 %v2006_v29 }
 0x117   : > { %v639_v42 = vpop.xlane.xlu0 %638  ;;  %v2011_v37 = vmax.f32 %v527_v26, %v655_v35  ;;  %742 = vadd.xlane.f32.xlu2 %v2008_v22  ;;  %v510_v36 = vpop.xlane.xlu1 %509 }
 0x118   : > { %v528_v28 = vmax.f32 %v510_v36, -1e+30 }
 0x119   : > { %v690_v43 = vsub.f32 %v1822_v59, %v2011_v37  ;;  %v786_v45 = vsub.f32 %v1844_v11, %v2011_v37  ;;  %vm946_vm1 = vcmp.gt.f32.partialorder %v2011_v37, -1e+29 }
 0x11b   : > { %v718_v46 = vmul.f32 1.442695, %v690_v43  ;;  %v814_v47 = vmul.f32 1.442695, %v786_v45 }
 0x11d   : > { %1529 = vpow2.f32 %v718_v46 }
 0x11e   : > { %1531 = vpow2.f32 %v814_v47  ;;  %v492_v48 = vpop.xlane.xlu2 %491 }
 0x11f   : > { %v519_v49 = vmax.f32 %v492_v48, -1e+30  ;;  %v649_v50 = vpop.xlane.xlu1 %648  ;;  %v486_v39 = vpop.xlane.xlu0 %485 }
 0x120   : > { %v2026_v11 = vmax.f32 %v524_v62, %v649_v50  ;;  %v516_v35 = vmax.f32 %v486_v39, -1e+30 }
 0x121   : > { %v2018_v20 = vmax.f32 %v519_v49, %v639_v42 }
 0x122   : > { %v687_v41 = vsub.f32 %v1818_v54, %v2026_v11  ;;  %v783_v49 = vsub.f32 %v1870_v38, %v2026_v11  ;;  %vm943_vm5 = vcmp.gt.f32.partialorder %v2026_v11, -1e+29 }
 0x123   : > { %v2020_v18 = vpop.eup %1529  ;;  %v682_v59 = vsub.f32 %v1865_v33, %v2018_v20  ;;  %v778_v25 = vsub.f32 %v1846_v12, %v2018_v20  ;;  %vm938_vm3 = vcmp.gt.f32.partialorder %v2018_v20, -1e+29 }
 0x124   : > { %v2024_v16 = vpop.eup %1531  ;;  %750 = vadd.xlane.f32.xlu0 %v2020_v18  ;;  %v712_v27 = vmul.f32 1.442695, %v687_v41 }
 0x125   : > { %846 = vadd.xlane.f32.xlu2 %v2024_v16  ;;  %v702_v3 = vmul.f32 1.442695, %v682_v59  ;;  %v808_v59 = vmul.f32 1.442695, %v783_v49 }
 0x126   : > { %v631_v6 = vpop.xlane.xlu2 %630 }
 0x127   : > { %v2031_v7 = vmax.f32 %v515_v0, %v631_v6  ;;  %v494_v17 = vpop.xlane.xlu1 %493  ;;  %1533 = vpow2.f32 %v702_v3  ;;  %v512_v19 = vpop.xlane.xlu0 %511 }
 0x128   : > { %v529_v38 = vmax.f32 %v512_v19, -1e+30 }
 0x129   : > { %v678_v33 = vsub.f32 %v1820_v56, %v2031_v7  ;;  %v774_v60 = vsub.f32 %v1887_v52, %v2031_v7  ;;  %v798_v52 = vmul.f32 1.442695, %v778_v25  ;;  %vm934_vm2 = vcmp.gt.f32.partialorder %v2031_v7, -1e+29 }
 0x12b   : > { %v694_v23 = vmul.f32 1.442695, %v678_v33  ;;  %v790_v24 = vmul.f32 1.442695, %v774_v60 }
 0x12d   : > { %1535 = vpow2.f32 %v694_v23  ;;  %v2041_v14 = vpop.eup %1533 }
 0x12e   : > { %1537 = vpow2.f32 %v790_v24  ;;  %v657_v54 = vpop.xlane.xlu2 %656  ;;  %734 = vadd.xlane.f32.xlu1 %v2041_v14 }
 0x12f   : > { %v2043_v26 = vmax.f32 %v528_v28, %v657_v54  ;;  %v633_v56 = vpop.xlane.xlu1 %632  ;;  %1539 = vpow2.f32 %v712_v27  ;;  %v651_v47 = vpop.xlane.xlu0 %650 }
 0x130   : > { %v2050_v36 = vmax.f32 %v516_v35, %v633_v56  ;;  %1541 = vpow2.f32 %v798_v52 }
 0x131   : > { %v691_v42 = vsub.f32 %v1842_v8, %v2043_v26  ;;  %v787_v12 = vsub.f32 %v1906_v13, %v2043_v26  ;;  %vm947_vm4 = vcmp.gt.f32.partialorder %v2043_v26, -1e+29 }
 0x132   : > { %v679_v13 = vsub.f32 %v1863_v32, %v2050_v36  ;;  %v775_v39 = vsub.f32 %v1916_v15, %v2050_v36  ;;  %v520_v32 = vmax.f32 %v494_v17, -1e+30  ;;  %vm935_vm6 = vcmp.gt.f32.partialorder %v2050_v36, -1e+29 }
 0x133   : > { %v2052_v43 = vpop.eup %1535  ;;  %v720_v45 = vmul.f32 1.442695, %v691_v42  ;;  %v816_v48 = vmul.f32 1.442695, %v787_v12 }
 0x134   : > { %v2054_v46 = vpop.eup %1537  ;;  %726 = vadd.xlane.f32.xlu0 %v2052_v43  ;;  %v696_v3 = vmul.f32 1.442695, %v679_v13  ;;  %v792_v41 = vmul.f32 1.442695, %v775_v39 }
 0x135   : > { %1543 = vpow2.f32 %v720_v45  ;;  %822 = vadd.xlane.f32.xlu2 %v2054_v46  ;;  %v2060_v8 = vpop.eup %1539 }
 0x136   : > { %v504_v50 = vpop.xlane.xlu2 %503  ;;  %744 = vadd.xlane.f32.xlu1 %v2060_v8  ;;  %1545 = vpow2.f32 %v816_v48  ;;  %v2067_v0 = vpop.eup %1541 }
 0x137   : > { %v659_v62 = vpop.xlane.xlu1 %658  ;;  %1547 = vpow2.f32 %v808_v59  ;;  %v525_v60 = vmax.f32 %v504_v50, -1e+30  ;;  %v496_v15 = vpop.xlane.xlu0 %495 }
 0x138   : > { %v2071_v33 = vmax.f32 %v529_v38, %v659_v62  ;;  %1549 = vpow2.f32 %v696_v3  ;;  %v521_v49 = vmax.f32 %v496_v15, -1e+30 }
 0x139   : > { %1551 = vpow2.f32 %v792_v41  ;;  %v2082_v28 = vmax.f32 %v525_v60, %v651_v47 }
 0x13a   : > { %v692_v27 = vsub.f32 %v1885_v51, %v2071_v33  ;;  %v788_v3 = vsub.f32 %v1936_v44, %v2071_v33  ;;  %vm948_vm9 = vcmp.gt.f32.partialorder %v2071_v33, -1e+29 }
 0x13b   : > { %v2069_v6 = vpop.eup %1543  ;;  %v688_v51 = vsub.f32 %v1934_v40, %v2082_v28  ;;  %vm944_vm8 = vcmp.gt.f32.partialorder %v2082_v28, -1e+29 }
 0x13c   : > { %830 = vadd.xlane.f32.xlu0 %v2067_v0  ;;  %v2075_v23 = vpop.eup %1545  ;;  %v722_v12 = vmul.f32 1.442695, %v692_v27 }
 0x13d   : > { %752 = vadd.xlane.f32.xlu2 %v2069_v6  ;;  %v2088_v56 = vpop.eup %1547  ;;  %v714_v40 = vmul.f32 1.442695, %v688_v51 }
 0x13e   : > { %v641_v24 = vpop.xlane.xlu2 %640  ;;  %848 = vadd.xlane.f32.xlu1 %v2075_v23  ;;  %v2090_v42 = vpop.eup %1549 }
 0x13f   : > { %v2077_v25 = vmax.f32 %v520_v32, %v641_v24  ;;  %v506_v19 = vpop.xlane.xlu1 %505  ;;  %v2096_v45 = vpop.eup %1551  ;;  %v818_v24 = vmul.f32 1.442695, %v788_v3 }
 0x140   : > { %v635_v13 = vpop.xlane.xlu0 %634 }
 0x141   : > { %v683_v17 = vsub.f32 %v1894_v55, %v2077_v25  ;;  %v779_v54 = vsub.f32 %v1948_v1, %v2077_v25  ;;  %v784_v55 = vsub.f32 %v1904_v10, %v2082_v28  ;;  %vm939_vm7 = vcmp.gt.f32.partialorder %v2077_v25, -1e+29 }
 0x143   : > { %v704_v35 = vmul.f32 1.442695, %v683_v17  ;;  %v800_v52 = vmul.f32 1.442695, %v779_v54  ;;  %v810_v39 = vmul.f32 1.442695, %v784_v55 }
 0x144   : > { %840 = vadd.xlane.f32.xlu0 %v2088_v56 }
 0x145   : > { %1553 = vpow2.f32 %v704_v35  ;;  %728 = vadd.xlane.f32.xlu2 %v2090_v42 }
 0x146   : > { %1555 = vpow2.f32 %v800_v52  ;;  %v488_v1 = vpop.xlane.xlu2 %487  ;;  %824 = vadd.xlane.f32.xlu1 %v2096_v45 }
 0x147   : > { %v517_v47 = vmax.f32 %v488_v1, -1e+30  ;;  %v643_v48 = vpop.xlane.xlu1 %642  ;;  %1557 = vpow2.f32 %v722_v12 }
 0x148   : > { %v2103_v62 = vmax.f32 %v521_v49, %v643_v48  ;;  %1559 = vpow2.f32 %v714_v40  ;;  %v661_v52 = vpop.xlane.xlu0 %660 }
 0x149   : > { %v2101_v50 = vmax.f32 %v517_v47, %v635_v13  ;;  %1561 = vpow2.f32 %v810_v39 }
 0x14a   : > { %v684_v60 = vsub.f32 %v1932_v21, %v2103_v62  ;;  %v526_v21 = vmax.f32 %v506_v19, -1e+30  ;;  %vm940_vm10 = vcmp.gt.f32.partialorder %v2103_v62, -1e+29 }
 0x14b   : > { %v2105_v59 = vpop.eup %1553  ;;  %v680_v10 = vsub.f32 %v1966_v30, %v2101_v50  ;;  %v780_v30 = vsub.f32 %v1970_v34, %v2103_v62  ;;  %v776_v54 = vsub.f32 %v1950_v2, %v2101_v50  ;;  %vm936_vm11 = vcmp.gt.f32.partialorder %v2101_v50, -1e+29 }
 0x14c   : > { %v2109_v38 = vpop.eup %1555  ;;  %736 = vadd.xlane.f32.xlu0 %v2105_v59  ;;  %v706_v27 = vmul.f32 1.442695, %v684_v60 }
 0x14d   : > { %832 = vadd.xlane.f32.xlu2 %v2109_v38  ;;  %v698_v41 = vmul.f32 1.442695, %v680_v10  ;;  %v2115_v32 = vpop.eup %1557  ;;  %v802_v35 = vmul.f32 1.442695, %v780_v30  ;;  %v794_v2 = vmul.f32 1.442695, %v776_v54 }
 0x14e   : > { %v514_v15 = vpop.xlane.xlu2 %513  ;;  %754 = vadd.xlane.f32.xlu1 %v2115_v32  ;;  %v2122_v44 = vpop.eup %1559  ;;  %v287_v10 = vld [vmem:[%s2145_s25 + $0x70] sm:$0xff]  ;;  %v286_v30 = vld [vmem:[%s2145_s25 + $0x68] sm:$0xff]  ;;  %v285_v54 = vld [vmem:[%s2145_s25 + $0x60] sm:$0xff] }
 0x14f   : > { %1563 = vpow2.f32 %v698_v41  ;;  %v2124_v17 = vpop.eup %1561  ;;  %v530_v12 = vmax.f32 %v514_v15, -1e+30  ;;  %v490_v51 = vpop.xlane.xlu1 %489 }
 0x150   : > { %1565 = vpow2.f32 %v818_v24  ;;  %v518_v3 = vmax.f32 %v490_v51, -1e+30  ;;  %v284_v51 = vld [vmem:[%s2145_s25 + $0x58] sm:$0xff] }
 0x151   : > { %1567 = vpow2.f32 %v706_v27  ;;  %v2135_v47 = vmax.f32 %v530_v12, %v661_v52 }
 0x152   : > { %1569 = vpow2.f32 %v802_v35 }
 0x153   : > { %1571 = vpow2.f32 %v794_v2  ;;  %v789_v60 = vsub.f32 %v1968_v31, %v2135_v47  ;;  %vm949_vm13 = vcmp.gt.f32.partialorder %v2135_v47, -1e+29 }
 0x154   : > { %746 = vadd.xlane.f32.xlu0 %v2122_v44 }
 0x155   : > { %842 = vadd.xlane.f32.xlu2 %v2124_v17  ;;  %v2130_v34 = vpop.eup %1563  ;;  %v820_v12 = vmul.f32 1.442695, %v789_v60  ;;  %v282_v60 = vld [vmem:[%s2145_s25 + $0x48] sm:$0xff] }
 0x156   : > { %v653_v55 = vpop.xlane.xlu2 %652  ;;  %730 = vadd.xlane.f32.xlu1 %v2130_v34  ;;  %v2147_v49 = vpop.eup %1565 }
 0x157   : > { %v2132_v1 = vmax.f32 %v526_v21, %v653_v55  ;;  %v2149_v40 = vpop.eup %1567  ;;  %v645_v27 = vpop.xlane.xlu1 %644 }
 0x158   : > { %v2157_v41 = vpop.eup %1569 }
 0x159   : > { %v689_v19 = vsub.f32 %v1952_v61, %v2132_v1  ;;  %v785_v48 = vsub.f32 %v1990_v4, %v2132_v1  ;;  %v288_v61 = vld [vmem:[%s2145_s25 + $0x78] sm:$0xff]  ;;  %v693_v4 = vsub.f32 %v1981_v57, %v2135_v47  ;;  %v637_v57 = vpop.xlane.xlu0 %636  ;;  %v2168_v52 = vpop.eup %1571  ;;  %vm945_vm12 = vcmp.gt.f32.partialorder %v2132_v1, -1e+29 }
 0x15a   : > { %1420 = vmatpush.msra.mxu2 %v288_v61  ;;  %1421 = vmatpush.msra.mxu3 %v288_v61  ;;  %v2164_v35 = vmax.f32 %v518_v3, %v637_v57  ;;  %v279_v57 = vld [vmem:[%s2145_s25 + $0x30] sm:$0xff] }
 0x15b   : > { %v716_v13 = vmul.f32 1.442695, %v689_v19  ;;  %v812_v39 = vmul.f32 1.442695, %v785_v48  ;;  %1047 = vmatpush.msra.mxu0 %v288_v61  ;;  %v724_v31 = vmul.f32 1.442695, %v693_v4  ;;  %1419 = vmatpush.msra.mxu1 %v288_v61 }
 0x15c   : > { %850 = vadd.xlane.f32.xlu0 %v2147_v49  ;;  %1423 = vmatpush.msra.mxu2 %v287_v10  ;;  %v681_v19 = vsub.f32 %v1983_v63, %v2164_v35  ;;  %vm937_vm14 = vcmp.gt.f32.partialorder %v2164_v35, -1e+29 }
 0x15d   : > { %1573 = vpow2.f32 %v716_v13  ;;  %738 = vadd.xlane.f32.xlu2 %v2149_v40  ;;  %1424 = vmatpush.msra.mxu3 %v287_v10 }
 0x15e   : > { %v498_v15 = vpop.xlane.xlu2 %497  ;;  %834 = vadd.xlane.f32.xlu1 %v2157_v41  ;;  %1575 = vpow2.f32 %v812_v39  ;;  %1048 = vmatpush.msra.mxu0 %v287_v10  ;;  %v777_v39 = vsub.f32 %v1979_v53, %v2164_v35  ;;  %v700_v63 = vmul.f32 1.442695, %v681_v19  ;;  %v274_v19 = vld [vmem:[%s2145_s25 + $0x8] sm:$0xff] }
 0x15f   : > { %v522_v24 = vmax.f32 %v498_v15, -1e+30  ;;  %1426 = vmatpush.msra.mxu2 %v286_v30  ;;  %1427 = vmatpush.msra.mxu3 %v286_v30  ;;  %1577 = vpow2.f32 %v724_v31  ;;  %v281_v15 = vld [vmem:[%s2145_s25 + $0x40] sm:$0xff] }
 0x160   : > { %1049 = vmatpush.msra.mxu0 %v286_v30  ;;  %1422 = vmatpush.msra.mxu1 %v287_v10  ;;  %1579 = vpow2.f32 %v820_v12  ;;  %v283_v10 = vld [vmem:[%s2145_s25 + $0x50] sm:$0xff]  ;;  %v277_v31 = vld [vmem:[%s2145_s25 + $0x20] sm:$0xff]  ;;  %v276_v12 = vld [vmem:[%s2145_s25 + $0x18] sm:$0xff] }
 0x161   : > { %v2166_v21 = vmax.f32 %v522_v24, %v645_v27  ;;  %1429 = vmatpush.msra.mxu2 %v285_v54  ;;  %1430 = vmatpush.msra.mxu3 %v285_v54  ;;  %v280_v24 = vld [vmem:[%s2145_s25 + $0x38] sm:$0xff] }
 0x162   : > { %1050 = vmatpush.msra.mxu0 %v285_v54  ;;  %1425 = vmatpush.msra.mxu1 %v286_v30 }
 0x163   : > { %v2171_v55 = vpop.eup %1573  ;;  %v685_v2 = vsub.f32 %v1997_v9, %v2166_v21  ;;  %1432 = vmatpush.msra.mxu2 %v284_v51  ;;  %1433 = vmatpush.msra.mxu3 %v284_v51  ;;  %v796_v9 = vmul.f32 1.442695, %v777_v39  ;;  %v781_v3 = vsub.f32 %v1992_v5, %v2166_v21  ;;  %vm941_vm15 = vcmp.gt.f32.partialorder %v2166_v21, -1e+29 }
 0x164   : > { %826 = vadd.xlane.f32.xlu0 %v2168_v52  ;;  %v2179_v13 = vpop.eup %1575  ;;  %1051 = vmatpush.msra.mxu0 %v284_v51 }
 0x165   : > { %748 = vadd.xlane.f32.xlu2 %v2171_v55  ;;  %v708_v48 = vmul.f32 1.442695, %v685_v2  ;;  %1428 = vmatpush.msra.mxu1 %v285_v54  ;;  %v2184_v61 = vpop.eup %1577  ;;  %v804_v30 = vmul.f32 1.442695, %v781_v3  ;;  %v278_v54 = vld [vmem:[%s2145_s25 + $0x28] sm:$0xff]  ;;  %v275_v2 = vld [vmem:[%s2145_s25 + $0x10] sm:$0xff] }
 0x166   : > { %844 = vadd.xlane.f32.xlu1 %v2179_v13  ;;  %v2187_v4 = vpop.eup %1579  ;;  %1435 = vmatpush.msra.mxu2 %v283_v10 }
 0x167   : > { %1581 = vpow2.f32 %v708_v48  ;;  %1431 = vmatpush.msra.mxu1 %v284_v51  ;;  %1436 = vmatpush.msra.mxu3 %v283_v10  ;;  %v273_v48 = vld [vmem:[%s2145_s25] sm:$0xff] }
 0x168   : > { %1583 = vpow2.f32 %v700_v63  ;;  %1438 = vmatpush.msra.mxu2 %v282_v60  ;;  %1052 = vmatpush.msra.mxu0 %v283_v10 }
 0x169   : > { %1585 = vpow2.f32 %v796_v9  ;;  %1439 = vmatpush.msra.mxu3 %v282_v60  ;;  %1434 = vmatpush.msra.mxu1 %v283_v10 }
 0x16a   : > { %1441 = vmatpush.msra.mxu2 %v281_v15  ;;  %1053 = vmatpush.msra.mxu0 %v282_v60  ;;  %1587 = vpow2.f32 %v804_v30 }
 0x16b   : > { %1442 = vmatpush.msra.mxu3 %v281_v15  ;;  %1437 = vmatpush.msra.mxu1 %v282_v60 }
 0x16c   : > { %756 = vadd.xlane.f32.xlu0 %v2184_v61  ;;  %1444 = vmatpush.msra.mxu2 %v280_v24 }
 0x16d   : > { %v2190_v53 = vpop.eup %1581  ;;  %852 = vadd.xlane.f32.xlu2 %v2187_v4  ;;  %1054 = vmatpush.msra.mxu0 %v281_v15 }
 0x16e   : > { %740 = vadd.xlane.f32.xlu1 %v2190_v53  ;;  %v2199_v5 = vpop.eup %1583  ;;  %1445 = vmatpush.msra.mxu3 %v280_v24 }
 0x16f   : > { %v2202_v27 = vpop.eup %1585  ;;  %1447 = vmatpush.msra.mxu2 %v279_v57  ;;  %1055 = vmatpush.msra.mxu0 %v280_v24 }
 0x170   : > { %1448 = vmatpush.msra.mxu3 %v279_v57  ;;  %1440 = vmatpush.msra.mxu1 %v281_v15  ;;  %v2209_v51 = vpop.eup %1587 }
 0x171   : > { %1450 = vmatpush.msra.mxu2 %v278_v54  ;;  %1056 = vmatpush.msra.mxu0 %v279_v57 }
 0x172   : > { %1451 = vmatpush.msra.mxu3 %v278_v54  ;;  %1443 = vmatpush.msra.mxu1 %v280_v24 }
 0x173   : > { %1453 = vmatpush.msra.mxu2 %v277_v31  ;;  %1057 = vmatpush.msra.mxu0 %v278_v54 }
 0x174   : > { %732 = vadd.xlane.f32.xlu0 %v2199_v5  ;;  %1454 = vmatpush.msra.mxu3 %v277_v31 }
 0x175   : > { %828 = vadd.xlane.f32.xlu2 %v2202_v27  ;;  %1456 = vmatpush.msra.mxu2 %v276_v12 }
 0x176   : > { %1457 = vmatpush.msra.mxu3 %v276_v12  ;;  %1446 = vmatpush.msra.mxu1 %v279_v57 }
 0x177   : > { %1459 = vmatpush.msra.mxu2 %v275_v2  ;;  %1058 = vmatpush.msra.mxu0 %v277_v31 }
 0x178   : > { %1460 = vmatpush.msra.mxu3 %v275_v2  ;;  %1449 = vmatpush.msra.mxu1 %v278_v54 }
 0x179   : > { %1462 = vmatpush.msra.mxu2 %v274_v19  ;;  %1059 = vmatpush.msra.mxu0 %v276_v12 }
 0x17a   : > { %1463 = vmatpush.msra.mxu3 %v274_v19  ;;  %1452 = vmatpush.msra.mxu1 %v277_v31 }
 0x17b   : > { %1465 = vmatpush.msra.mxu2 %v273_v48  ;;  %1060 = vmatpush.msra.mxu0 %v275_v2 }
 0x17c   : > { %836 = vadd.xlane.f32.xlu0 %v2209_v51  ;;  %1466 = vmatpush.msra.mxu3 %v273_v48 }
 0x17d   : > { %1455 = vmatpush.msra.mxu1 %v276_v12  ;;  %1061 = vmatpush.msra.mxu0 %v274_v19 }
 0x17f   : > { %1458 = vmatpush.msra.mxu1 %v275_v2  ;;  %1062 = vmatpush.msra.mxu0 %v273_v48 }
 0x181   : > { %1461 = vmatpush.msra.mxu1 %v274_v19 }
 0x183   : > { %1464 = vmatpush.msra.mxu1 %v273_v48 }
 0x189   : > { %v839_v39 = vpop.xlane.xlu1 %838 }
 0x18a   : > { %v743_v63 = vpop.xlane.xlu2 %742 }
 0x18b   : > { %v862_v9 = vadd.f32 %v839_v39, %v743_v63 }
 0x18d   : > { %1589 = vrcp.f32 %v862_v9 }
 0x193   : > { %v1590_v10 = vpop.eup %1589 }
 0x194   : > { %v894_v3 = vmul.f32 %v1590_v10, %v862_v9 }
 0x196   : > { %v910_v60 = vsub.f32 2.0, %v894_v3 }
 0x197   : > { %v751_v15 = vpop.xlane.xlu0 %750 }
 0x198   : > { %v926_v30 = vmul.f32 %v1590_v10, %v910_v60  ;;  %v847_v24 = vpop.xlane.xlu2 %846 }
 0x199   : > { %v866_v57 = vadd.f32 %v847_v24, %v751_v15 }
 0x19a   : > { %v958_v54 = vsel %vm942_vm0, %v926_v30, 0.0  ;;  %vm1112_vm0 = vcmask 261120  }
 0x19b   : > { %1591 = vrcp.f32 %v866_v57  ;;  %v974_v31 = vmul.f32 %v2008_v22, %v958_v54  ;;  %v1006_v12 = vmul.f32 %v2006_v29, %v958_v54 }
 0x19d   : > { %990 = vst [vmem:[%s2220_s30 + $0x40] sm:$0xff] %v974_v31  ;;  %v1039_v2 = vadd.f32 %v1006_v12, %v974_v31 }
 0x19e   : > { %1323 = vst [vmem:[%s2220_s30 + $0xc0] sm:$0xff] %v1006_v12 }
 0x19f   : > { %1087 = vmatmul.f32.vlgmr.msra.gmra.mxu2 %v1039_v2 }
 0x1a1   : > { %v1592_v19 = vpop.eup %1591  ;;  %v735_v39 = vpop.xlane.xlu1 %734 }
 0x1a2   : > { %v898_v48 = vmul.f32 %v1592_v19, %v866_v57 }
 0x1a4   : > { %v914_v58 = vsub.f32 2.0, %v898_v48 }
 0x1a6   : > { %v930_v63 = vmul.f32 %v1592_v19, %v914_v58 }
 0x1a7   : > { %v727_v22 = vpop.xlane.xlu0 %726 }
 0x1a8   : > { %v823_v9 = vpop.xlane.xlu2 %822  ;;  %v962_v29 = vsel %vm946_vm1, %v930_v63, 0.0 }
 0x1a9   : > { %v854_v10 = vadd.f32 %v823_v9, %v727_v22  ;;  %v978_v3 = vmul.f32 %v2020_v18, %v962_v29  ;;  %v1010_v60 = vmul.f32 %v2024_v16, %v962_v29  ;;  %v745_v15 = vpop.xlane.xlu1 %744 }
 0x1ab   : > { %1593 = vrcp.f32 %v854_v10  ;;  %994 = vst [vmem:[%s2220_s30 + $0x60] sm:$0xff] %v978_v3  ;;  %v1043_v30 = vadd.f32 %v1010_v60, %v978_v3 }
 0x1ac   : > { %1327 = vst [vmem:[%s2220_s30 + $0xe0] sm:$0xff] %v1010_v60 }
 0x1ad   : > { %1099 = vmatmul.f32.vlgmr.msra.gmra.mxu3 %v1043_v30 }
 0x1af   : > { %v831_v24 = vpop.xlane.xlu0 %830 }
 0x1b0   : > { %v858_v57 = vadd.f32 %v831_v24, %v735_v39  ;;  %v753_v54 = vpop.xlane.xlu2 %752 }
 0x1b1   : > { %v1594_v31 = vpop.eup %1593  ;;  %v849_v37 = vpop.xlane.xlu1 %848 }
 0x1b2   : > { %v886_v12 = vmul.f32 %v1594_v31, %v854_v10  ;;  %1595 = vrcp.f32 %v858_v57  ;;  %v867_v2 = vadd.f32 %v849_v37, %v753_v54 }
 0x1b4   : > { %v902_v19 = vsub.f32 2.0, %v886_v12  ;;  %1597 = vrcp.f32 %v867_v2 }
 0x1b6   : > { %v918_v18 = vmul.f32 %v1594_v31, %v902_v19 }
 0x1b7   : > { %v841_v16 = vpop.xlane.xlu0 %840 }
 0x1b8   : > { %v1596_v48 = vpop.eup %1595  ;;  %v863_v58 = vadd.f32 %v841_v16, %v745_v15  ;;  %v729_v63 = vpop.xlane.xlu2 %728  ;;  %v950_v22 = vsel %vm934_vm2, %v918_v18, 0.0 }
 0x1b9   : > { %v890_v9 = vmul.f32 %v1596_v48, %v858_v57  ;;  %v966_v39 = vmul.f32 %v2052_v43, %v950_v22  ;;  %v998_v29 = vmul.f32 %v2054_v46, %v950_v22  ;;  %v825_v10 = vpop.xlane.xlu1 %824 }
 0x1ba   : > { %1599 = vrcp.f32 %v863_v58  ;;  %v1598_v3 = vpop.eup %1597  ;;  %v855_v30 = vadd.f32 %v825_v10, %v729_v63 }
 0x1bb   : > { %v906_v60 = vsub.f32 2.0, %v890_v9  ;;  %982 = vst [vmem:[%s2220_s30] sm:$0xff] %v966_v39  ;;  %v1031_v24 = vadd.f32 %v998_v29, %v966_v39  ;;  %v899_v54 = vmul.f32 %v1598_v3, %v867_v2 }
 0x1bc   : > { %1315 = vst [vmem:[%s2220_s30 + $0x80] sm:$0xff] %v998_v29  ;;  %1601 = vrcp.f32 %v855_v30 }
 0x1bd   : > { %v922_v7 = vmul.f32 %v1596_v48, %v906_v60  ;;  %1063 = vmatmul.f32.vlgmr.msra.gmra.mxu0 %v1031_v24  ;;  %v915_v15 = vsub.f32 2.0, %v899_v54 }
 0x1bf   : > { %v737_v57 = vpop.xlane.xlu0 %736  ;;  %v954_v43 = vsel %vm938_vm3, %v922_v7, 0.0  ;;  %v931_v31 = vmul.f32 %v1598_v3, %v915_v15 }
 0x1c0   : > { %v1600_v46 = vpop.eup %1599  ;;  %v833_v12 = vpop.xlane.xlu2 %832  ;;  %v970_v37 = vmul.f32 %v2041_v14, %v954_v43  ;;  %v1002_v19 = vmul.f32 %v2067_v0, %v954_v43 }
 0x1c1   : > { %v895_v2 = vmul.f32 %v1600_v46, %v863_v58  ;;  %v859_v18 = vadd.f32 %v833_v12, %v737_v57  ;;  %v755_v16 = vpop.xlane.xlu1 %754  ;;  %v963_v20 = vsel %vm947_vm4, %v931_v31, 0.0 }
 0x1c2   : > { %986 = vst [vmem:[%s2220_s30 + $0x20] sm:$0xff] %v970_v37  ;;  %v1035_v48 = vadd.f32 %v1002_v19, %v970_v37  ;;  %v1602_v63 = vpop.eup %1601  ;;  %v979_v9 = vmul.f32 %v2069_v6, %v963_v20  ;;  %v1011_v14 = vmul.f32 %v2075_v23, %v963_v20 }
 0x1c3   : > { %v911_v22 = vsub.f32 2.0, %v895_v2  ;;  %1603 = vrcp.f32 %v859_v18  ;;  %1319 = vst [vmem:[%s2220_s30 + $0xa0] sm:$0xff] %v1002_v19  ;;  %v887_v39 = vmul.f32 %v1602_v63, %v855_v30 }
 0x1c4   : > { %1075 = vmatmul.f32.vlgmr.msra.gmra.mxu1 %v1035_v48  ;;  %995 = vst [vmem:[%s2220_s30 + $0x68] sm:$0xff] %v979_v9  ;;  %v1044_v26 = vadd.f32 %v1011_v14, %v979_v9 }
 0x1c5   : > { %v927_v0 = vmul.f32 %v1600_v46, %v911_v22  ;;  %v903_v58 = vsub.f32 2.0, %v887_v39  ;;  %1328 = vst [vmem:[%s2220_s30 + $0xe8] sm:$0xff] %v1011_v14 }
 0x1c6   : > { %1102 = vmatmul.f32.gmra.mxu3 %v1044_v26 }
 0x1c7   : > { %v747_v29 = vpop.xlane.xlu0 %746  ;;  %v959_v10 = vsel %vm943_vm5, %v927_v0, 0.0  ;;  %v919_v3 = vmul.f32 %v1602_v63, %v903_v58 }
 0x1c8   : > { %v843_v60 = vpop.xlane.xlu2 %842  ;;  %v975_v6 = vmul.f32 %v2060_v8, %v959_v10  ;;  %v1007_v23 = vmul.f32 %v2088_v56, %v959_v10 }
 0x1c9   : > { %v1604_v30 = vpop.eup %1603  ;;  %v864_v24 = vadd.f32 %v843_v60, %v747_v29  ;;  %v731_v11 = vpop.xlane.xlu1 %730  ;;  %v951_v15 = vsel %vm935_vm6, %v919_v3, 0.0 }
 0x1ca   : > { %v891_v54 = vmul.f32 %v1604_v30, %v859_v18  ;;  %991 = vst [vmem:[%s2220_s30 + $0x48] sm:$0xff] %v975_v6  ;;  %v1040_v7 = vadd.f32 %v1007_v23, %v975_v6  ;;  %v967_v57 = vmul.f32 %v2090_v42, %v951_v15  ;;  %v999_v43 = vmul.f32 %v2096_v45, %v951_v15 }
 0x1cb   : > { %1605 = vrcp.f32 %v864_v24  ;;  %1324 = vst [vmem:[%s2220_s30 + $0xc8] sm:$0xff] %v1007_v23 }
 0x1cc   : > { %v907_v8 = vsub.f32 2.0, %v891_v54  ;;  %1090 = vmatmul.f32.gmra.mxu2 %v1040_v7  ;;  %983 = vst [vmem:[%s2220_s30 + $0x8] sm:$0xff] %v967_v57  ;;  %v1032_v56 = vadd.f32 %v999_v43, %v967_v57 }
 0x1cd   : > { %1316 = vst [vmem:[%s2220_s30 + $0x88] sm:$0xff] %v999_v43 }
 0x1ce   : > { %v923_v46 = vmul.f32 %v1604_v30, %v907_v8  ;;  %1066 = vmatmul.f32.gmra.mxu0 %v1032_v56 }
 0x1cf   : > { %v851_v36 = vpop.xlane.xlu0 %850 }
 0x1d0   : > { %v868_v31 = vadd.f32 %v851_v36, %v755_v16  ;;  %v739_v12 = vpop.xlane.xlu2 %738  ;;  %v955_v37 = vsel %vm939_vm7, %v923_v46, 0.0 }
 0x1d1   : > { %v1606_v19 = vpop.eup %1605  ;;  %v971_v42 = vmul.f32 %v2105_v59, %v955_v37  ;;  %v1003_v45 = vmul.f32 %v2109_v38, %v955_v37  ;;  %v835_v18 = vpop.xlane.xlu1 %834 }
 0x1d2   : > { %v896_v2 = vmul.f32 %v1606_v19, %v864_v24  ;;  %1607 = vrcp.f32 %v868_v31  ;;  %v860_v48 = vadd.f32 %v835_v18, %v739_v12 }
 0x1d3   : > { %987 = vst [vmem:[%s2220_s30 + $0x28] sm:$0xff] %v971_v42  ;;  %v1036_v20 = vadd.f32 %v1003_v45, %v971_v42 }
 0x1d4   : > { %v912_v63 = vsub.f32 2.0, %v896_v2  ;;  %1320 = vst [vmem:[%s2220_s30 + $0xa8] sm:$0xff] %v1003_v45  ;;  %1609 = vrcp.f32 %v860_v48 }
 0x1d5   : > { %1078 = vmatmul.f32.gmra.mxu1 %v1036_v20 }
 0x1d6   : > { %v928_v25 = vmul.f32 %v1606_v19, %v912_v63 }
 0x1d7   : > { %v827_v16 = vpop.xlane.xlu0 %826 }
 0x1d8   : > { %v1608_v22 = vpop.eup %1607  ;;  %v856_v59 = vadd.f32 %v827_v16, %v731_v11  ;;  %v749_v9 = vpop.xlane.xlu2 %748  ;;  %v960_v38 = vsel %vm944_vm8, %v928_v25, 0.0 }
 0x1d9   : > { %v900_v14 = vmul.f32 %v1608_v22, %v868_v31  ;;  %v976_v39 = vmul.f32 %v2122_v44, %v960_v38  ;;  %v1008_v0 = vmul.f32 %v2124_v17, %v960_v38  ;;  %v845_v26 = vpop.xlane.xlu1 %844 }
 0x1da   : > { %1611 = vrcp.f32 %v856_v59  ;;  %v1610_v58 = vpop.eup %1609  ;;  %v865_v10 = vadd.f32 %v845_v26, %v749_v9 }
 0x1db   : > { %v916_v29 = vsub.f32 2.0, %v900_v14  ;;  %992 = vst [vmem:[%s2220_s30 + $0x50] sm:$0xff] %v976_v39  ;;  %v1041_v3 = vadd.f32 %v1008_v0, %v976_v39  ;;  %v892_v60 = vmul.f32 %v1610_v58, %v860_v48 }
 0x1dc   : > { %1325 = vst [vmem:[%s2220_s30 + $0xd0] sm:$0xff] %v1008_v0  ;;  %1613 = vrcp.f32 %v865_v10 }
 0x1dd   : > { %v932_v28 = vmul.f32 %v1608_v22, %v916_v29  ;;  %1093 = vmatmul.f32.gmra.mxu2 %v1041_v3  ;;  %v908_v6 = vsub.f32 2.0, %v892_v60 }
 0x1df   : > { %v757_v23 = vpop.xlane.xlu0 %756  ;;  %v964_v44 = vsel %vm948_vm9, %v932_v28, 0.0  ;;  %v924_v30 = vmul.f32 %v1610_v58, %v908_v6 }
 0x1e0   : > { %v1612_v17 = vpop.eup %1611  ;;  %v853_v24 = vpop.xlane.xlu2 %852  ;;  %v980_v54 = vmul.f32 %v2115_v32, %v964_v44  ;;  %v1012_v11 = vmul.f32 %v2147_v49, %v964_v44 }
 0x1e1   : > { %v888_v7 = vmul.f32 %v1612_v17, %v856_v59  ;;  %v869_v15 = vadd.f32 %v853_v24, %v757_v23  ;;  %v956_v33 = vsel %vm940_vm10, %v924_v30, 0.0  ;;  %v741_v1 = vpop.xlane.xlu1 %740 }
 0x1e2   : > { %996 = vst [vmem:[%s2220_s30 + $0x70] sm:$0xff] %v980_v54  ;;  %v1045_v57 = vadd.f32 %v1012_v11, %v980_v54  ;;  %v1614_v43 = vpop.eup %1613  ;;  %v972_v56 = vmul.f32 %v2149_v40, %v956_v33  ;;  %v1004_v46 = vmul.f32 %v2157_v41, %v956_v33 }
 0x1e3   : > { %v904_v8 = vsub.f32 2.0, %v888_v7  ;;  %1615 = vrcp.f32 %v869_v15  ;;  %1329 = vst [vmem:[%s2220_s30 + $0xf0] sm:$0xff] %v1012_v11  ;;  %v897_v32 = vmul.f32 %v1614_v43, %v865_v10 }
 0x1e4   : > { %1105 = vmatmul.f32.gmra.mxu3 %v1045_v57  ;;  %988 = vst [vmem:[%s2220_s30 + $0x30] sm:$0xff] %v972_v56  ;;  %v1037_v62 = vadd.f32 %v1004_v46, %v972_v56 }
 0x1e5   : > { %v920_v49 = vmul.f32 %v1612_v17, %v904_v8  ;;  %v913_v36 = vsub.f32 2.0, %v897_v32  ;;  %1321 = vst [vmem:[%s2220_s30 + $0xb0] sm:$0xff] %v1004_v46 }
 0x1e6   : > { %1081 = vmatmul.f32.gmra.mxu1 %v1037_v62 }
 0x1e7   : > { %v733_v31 = vpop.xlane.xlu0 %732  ;;  %v952_v12 = vsel %vm936_vm11, %v920_v49, 0.0  ;;  %v929_v37 = vmul.f32 %v1614_v43, %v913_v36 }
 0x1e8   : > { %v829_v19 = vpop.xlane.xlu2 %828  ;;  %v968_v40 = vmul.f32 %v2130_v34, %v952_v12  ;;  %v1000_v41 = vmul.f32 %v2168_v52, %v952_v12 }
 0x1e9   : > { %v1616_v42 = vpop.eup %1615  ;;  %v857_v45 = vadd.f32 %v829_v19, %v733_v31  ;;  %v961_v50 = vsel %vm945_vm12, %v929_v37, 0.0 }
 0x1ea   : > { %v901_v2 = vmul.f32 %v1616_v42, %v869_v15  ;;  %984 = vst [vmem:[%s2220_s30 + $0x10] sm:$0xff] %v968_v40  ;;  %v1033_v18 = vadd.f32 %v1000_v41, %v968_v40  ;;  %v977_v48 = vmul.f32 %v2171_v55, %v961_v50  ;;  %v1009_v20 = vmul.f32 %v2179_v13, %v961_v50 }
 0x1eb   : > { %1617 = vrcp.f32 %v857_v45  ;;  %1317 = vst [vmem:[%s2220_s30 + $0x90] sm:$0xff] %v1000_v41 }
 0x1ec   : > { %v917_v63 = vsub.f32 2.0, %v901_v2  ;;  %1069 = vmatmul.f32.gmra.mxu0 %v1033_v18  ;;  %993 = vst [vmem:[%s2220_s30 + $0x58] sm:$0xff] %v977_v48  ;;  %v1042_v34 = vadd.f32 %v1009_v20, %v977_v48 }
 0x1ed   : > { %1326 = vst [vmem:[%s2220_s30 + $0xd8] sm:$0xff] %v1009_v20 }
 0x1ee   : > { %v933_v52 = vmul.f32 %v1616_v42, %v917_v63  ;;  %1096 = vmatmul.f32.gmra.mxu2 %v1042_v34 }
 0x1ef   : > { %v837_v25 = vpop.xlane.xlu0 %836 }
 0x1f0   : > { %v861_v16 = vadd.f32 %v837_v25, %v741_v1  ;;  %v965_v22 = vsel %vm949_vm13, %v933_v52, 0.0 }
 0x1f1   : > { %v1618_v59 = vpop.eup %1617  ;;  %v981_v55 = vmul.f32 %v2184_v61, %v965_v22  ;;  %v1013_v13 = vmul.f32 %v2187_v4, %v965_v22 }
 0x1f2   : > { %v889_v9 = vmul.f32 %v1618_v59, %v857_v45  ;;  %1619 = vrcp.f32 %v861_v16 }
 0x1f3   : > { %997 = vst [vmem:[%s2220_s30 + $0x78] sm:$0xff] %v981_v55  ;;  %v1046_v38 = vadd.f32 %v1013_v13, %v981_v55 }
 0x1f4   : > { %v905_v14 = vsub.f32 2.0, %v889_v9  ;;  %1330 = vst [vmem:[%s2220_s30 + $0xf8] sm:$0xff] %v1013_v13 }
 0x1f5   : > { %1108 = vmatmul.f32.gmra.mxu3 %v1046_v38 }
 0x1f6   : > { %v921_v39 = vmul.f32 %v1618_v59, %v905_v14 }
 0x1f8   : > { %v1620_v47 = vpop.eup %1619  ;;  %v953_v0 = vsel %vm937_vm14, %v921_v39, 0.0 }
 0x1f9   : > { %v893_v26 = vmul.f32 %v1620_v47, %v861_v16  ;;  %v969_v61 = vmul.f32 %v2199_v5, %v953_v0  ;;  %v1001_v4 = vmul.f32 %v2202_v27, %v953_v0 }
 0x1fb   : > { %v909_v58 = vsub.f32 2.0, %v893_v26  ;;  %985 = vst [vmem:[%s2220_s30 + $0x18] sm:$0xff] %v969_v61  ;;  %v1034_v29 = vadd.f32 %v1001_v4, %v969_v61 }
 0x1fc   : > { %1318 = vst [vmem:[%s2220_s30 + $0x98] sm:$0xff] %v1001_v4 }
 0x1fd   : > { %v925_v10 = vmul.f32 %v1620_v47, %v909_v58  ;;  %1072 = vmatmul.f32.gmra.mxu0 %v1034_v29 }
 0x1ff   : > { %v957_v3 = vsel %vm941_vm15, %v925_v10, 0.0 }
 0x200   : > { %v973_v35 = vmul.f32 %v2190_v53, %v957_v3  ;;  %v1005_v60 = vmul.f32 %v2209_v51, %v957_v3 }
 0x202   : > { %989 = vst [vmem:[%s2220_s30 + $0x38] sm:$0xff] %v973_v35  ;;  %v1038_v28 = vadd.f32 %v1005_v60, %v973_v35 }
 0x203   : > { %1322 = vst [vmem:[%s2220_s30 + $0xb8] sm:$0xff] %v1005_v60 }
 0x204   : > { %1084 = vmatmul.f32.gmra.mxu1 %v1038_v28 }
 0x222   : > { %v1088_v21 = vpop.f32.mrf.mxu2 }
 0x223   : > { %1121 = vst.msk [vmem:[%s2303_s9 + $0x40] sm:$0xff] %vm1112_vm0, %v1088_v21 }
 0x230   : > { %v1100_v53 = vpop.f32.mrf.mxu3 }
 0x231   : > { %1125 = vst.msk [vmem:[%s2303_s9 + $0x60] sm:$0xff] %vm1112_vm0, %v1100_v53 }
 0x23a   : > { %v1064_v5 = vpop.f32.mrf.mxu0 }
 0x23b   : > { %1113 = vst.msk [vmem:[%s2303_s9] sm:$0xff] %vm1112_vm0, %v1064_v5 }
 0x241   : > { %v1076_v27 = vpop.f32.mrf.mxu1 }
 0x242   : > { %1117 = vst.msk [vmem:[%s2303_s9 + $0x20] sm:$0xff] %vm1112_vm0, %v1076_v27 }
 0x249   : > { %v1103_v51 = vpop.f32.mrf.mxu3 }
 0x24a   : > { %1126 = vst.msk [vmem:[%s2303_s9 + $0x68] sm:$0xff] %vm1112_vm0, %v1103_v51 }
 0x24b   : > { %v1067_v6 = vpop.f32.mrf.mxu0 }
 0x24c   : > { %1114 = vst.msk [vmem:[%s2303_s9 + $0x8] sm:$0xff] %vm1112_vm0, %v1067_v6 }
 0x24f   : > { %v1091_v23 = vpop.f32.mrf.mxu2 }
 0x250   : > { %1122 = vst.msk [vmem:[%s2303_s9 + $0x48] sm:$0xff] %vm1112_vm0, %v1091_v23 }
 0x252   : > { %v1079_v44 = vpop.f32.mrf.mxu1 }
 0x253   : > { %1118 = vst.msk [vmem:[%s2303_s9 + $0x28] sm:$0xff] %vm1112_vm0, %v1079_v44 }
 0x260   : > { %v1094_v17 = vpop.f32.mrf.mxu2 }
 0x261   : > { %1123 = vst.msk [vmem:[%s2303_s9 + $0x50] sm:$0xff] %vm1112_vm0, %v1094_v17 }
 0x263   : > { %v1082_v30 = vpop.f32.mrf.mxu1 }
 0x264   : > { %1119 = vst.msk [vmem:[%s2303_s9 + $0x30] sm:$0xff] %vm1112_vm0, %v1082_v30 }
 0x267   : > { %v1106_v24 = vpop.f32.mrf.mxu3 }
 0x268   : > { %1127 = vst.msk [vmem:[%s2303_s9 + $0x70] sm:$0xff] %vm1112_vm0, %v1106_v24 }
 0x269   : > { %v1070_v54 = vpop.f32.mrf.mxu0 }
 0x26a   : > { %1115 = vst.msk [vmem:[%s2303_s9 + $0x10] sm:$0xff] %vm1112_vm0, %v1070_v54 }
 0x271   : > { %v1097_v11 = vpop.f32.mrf.mxu2 }
 0x272   : > { %1124 = vst.msk [vmem:[%s2303_s9 + $0x58] sm:$0xff] %vm1112_vm0, %v1097_v11 }
 0x278   : > { %v1109_v7 = vpop.f32.mrf.mxu3 }
 0x279   : > { %1128 = vst.msk [vmem:[%s2303_s9 + $0x78] sm:$0xff] %vm1112_vm0, %v1109_v7 }
 0x27a   : > { %v1073_v15 = vpop.f32.mrf.mxu0 }
 0x27b   : > { %1116 = vst.msk [vmem:[%s2303_s9 + $0x18] sm:$0xff] %vm1112_vm0, %v1073_v15 }
 0x281   : > { %v1085_v57 = vpop.f32.mrf.mxu1 }
 0x282   : > { %1120 = vst.msk [vmem:[%s2303_s9 + $0x38] sm:$0xff] %vm1112_vm0, %v1085_v57 }
 0x283   : > { %s1339_s10 = sshll.u32 %s1716_s22, 7  ;;  %s1160_s11 = sshll.u32 %s2220_s30, 4  ;;  %s1161_s11 = int_to_ptr.vmem [resolvable:$true] %s1160_s11 }
 0x284   : > { %s1149_s14 = scalar_lea.hbm %s2380_s5, %s1339_s10  ;;  %s1658_s17 = smov 2048  }
 0x285   : > { %s1162_s15 = sshll.u32 %s1149_s14, 4  ;;  %1467 = sst [smem:[#allocation5]] (%p1733_p5), %s1658_s17  ;;  %s1163_s15 = int_to_ptr.hbm [resolvable:$true] %s1162_s15 }
 0x286   : > { %s1659_s16 = smov 8192   ;;  %s1660_s23 = smov 16  }
 0x287   : > { %1468 = sst [smem:[#allocation5 + $0x1]] (%p1733_p5), %s1659_s16  ;;  %s1661_s22 = smov 128  }
 0x288   : > { %1469 = sst [smem:[#allocation5 + $0x2]] (%p1733_p5), %s1660_s23  ;;  %s1662_s25 = smov 8  }
 0x289   : > { %1470 = sst [smem:[#allocation5 + $0x3]] (%p1733_p5), %s1661_s22  ;;  %s1663_s26 = smov [#allocation4]  }
 0x28a   : > { %1471 = sst [smem:[#allocation5 + $0x4]] (%p1733_p5), %s1661_s22  ;;  %s1664_s30 = smov 0  }
 0x28b   : > { %1472 = sst [smem:[#allocation5 + $0x5]] (%p1733_p5), %s1662_s25 }
 0x28c   : > { %1473 = dma.general (%p1733_p5), %s1161_s11, 4096, %s1163_s15, %s1135_s6, %s1663_s26, [#allocation5], %s1664_s30, 0  }
 0x28d PF: > { %p1479_p11 = scmp.ge.s32.totalorder %s1655_s21, 2  ;;  %s1198_s7 = sand.u32 1, %s1643_s18  }
 0x28e   : > { %s1199_s8 = scalar_lea.sflag [#allocation3], %s1198_s7 }
 0x28f   : > { %p1476_p12 = pnand %p1479_p11, %p1737_p6 }
 0x291   : > { %p1477_p13 = pneg %p1476_p12 }
 0x293   : > { %1638 = dma.done.wait (%p1477_p13), %s1199_s8, 4096  }
 0x294   : > { %1640 = vsyncadd (%p1477_p13), %s1199_s8, 4294963200  ;;  %p16_p0 = scmp.ge.s32.totalorder %s1720_s24, 6   ;;  %s2383_s18 = smov %s1647_s19 }
 0x295   : > { %s2384_s19 = smov %s1651_s20  ;;  %s2385_s20 = smov %s1731_s27 }
 0x296   : > { %s2386_s21 = smov %s1720_s24  ;;  %18 = sbr.rel (!%p16_p0) target bundleno = 3 (0x3), region = 96 }
 0x29b   :  { %1205 = vsyncpa [#allocation3], 1 }
 0x29c   :  { %1207 = vsyncpa [#allocation3 + $0x1], 1 }

</bundles_post_ra>
